<compile_context>
chip_gen: v7x
topology: tpu7x:2x2x1
jax: 0.10.0
libtpu: 0.0.40
codegen_flags: <defaults>
</compile_context>

<pallas_src>
import functools

import jax
import jax.numpy as jnp
import numpy as np
from jax.experimental import pallas as pl
from jax.experimental.pallas import tpu as pltpu

DIM = 64
NEG_SLOPE = 0.01          # PyTorch nn.LeakyReLU() default (the spec passes no arg)
MAX_B_TILE = 16           # images folded into the matmul M dimension per grid step


def _pick_b_tile(batch):
    """Largest divisor of `batch` <= MAX_B_TILE, preferring an even grid of >= 2
    steps so the 'parallel' batch axis can split across v7x's two TensorCores."""
    best = 1
    for t in range(1, min(batch, MAX_B_TILE) + 1):
        if batch % t == 0:
            best = t
    if batch // best == 1 and best > 1:
        for t in range(best - 1, 0, -1):
            if batch % t == 0 and (batch // t) % 2 == 0:
                return t
    return best


# ----------------------------------------------------------------------------
# Pallas kernels.
# ----------------------------------------------------------------------------
def _mm_bias_lrelu_kernel(x_ref, w_ref, b_ref, o_ref):
    """(rows, K) @ (K, Cout) on the MXU with f32 accumulation, then bias +
    LeakyReLU in f32 on the VPU, stored as bf16 (lane-dense Cout >= 128)."""
    acc = jnp.dot(x_ref[...], w_ref[...], preferred_element_type=jnp.float32)
    acc = acc + b_ref[...]                               # (1, Cout) broadcast, f32
    acc = jnp.where(acc >= 0.0, acc, NEG_SLOPE * acc)    # LeakyReLU (f32 VPU)
    o_ref[...] = acc.astype(o_ref.dtype)


def _mm_bias_lrelu_linear_kernel(x_ref, w_ref, b_ref, wl_ref, bl_ref, o_ref, *,
                                 b_tile):
    """Layer-3 conv matmul fused with the final Linear(4096, 1).  The
    (b_tile*16, 256) conv activation never leaves VMEM."""
    acc = jnp.dot(x_ref[...], w_ref[...], preferred_element_type=jnp.float32)
    acc = acc + b_ref[...]
    acc = jnp.where(acc >= 0.0, acc, NEG_SLOPE * acc)    # (b_tile*16, 256) f32
    accr = acc.reshape(b_tile, 16, acc.shape[-1])        # leading-dim split only
    prod = accr * wl_ref[...]                            # (1,16,256) f32 broadcast
    s = jnp.sum(prod, axis=2, keepdims=True)             # lane reduce   -> (b_tile,16,1)
    s = jnp.sum(s, axis=1, keepdims=True)                # sublane reduce-> (b_tile,1,1)
    o_ref[...] = s + bl_ref[...]


# ----------------------------------------------------------------------------
# pallas_call wrappers (batch-tiled grid, resident weights).
# ----------------------------------------------------------------------------
def _conv_matmul(patches, w, b, *, rows_per_img, batch, b_tile):
    rows_blk = b_tile * rows_per_img
    k = patches.shape[1]
    cout = w.shape[1]
    flops = 2 * batch * rows_per_img * k * cout
    bytes_accessed = (patches.size + w.size + batch * rows_per_img * cout) * 2 + b.size * 4
    return pl.pallas_call(
        _mm_bias_lrelu_kernel,
        out_shape=jax.ShapeDtypeStruct((batch * rows_per_img, cout), jnp.bfloat16),
        grid=(batch // b_tile,),
        in_specs=[
            pl.BlockSpec((rows_blk, k), lambda g: (g, 0)),
            pl.BlockSpec((k, cout), lambda g: (0, 0)),     # constant index: fetched once
            pl.BlockSpec((1, cout), lambda g: (0, 0)),     # constant index: fetched once
        ],
        out_specs=pl.BlockSpec((rows_blk, cout), lambda g: (g, 0)),
        compiler_params=pltpu.CompilerParams(dimension_semantics=("parallel",)),
        cost_estimate=pl.CostEstimate(flops=flops, transcendentals=0,
                                      bytes_accessed=bytes_accessed),
    )(patches, w, b)


def _conv3_linear(patches, w, b, wl, bl, *, batch, b_tile):
    rows_per_img = 16
    rows_blk = b_tile * rows_per_img
    k = patches.shape[1]                      # 2048
    cout = w.shape[1]                         # 256
    flops = 2 * batch * rows_per_img * k * cout + 2 * batch * rows_per_img * cout
    bytes_accessed = (patches.size + w.size) * 2 + (b.size + wl.size + bl.size + batch) * 4
    out = pl.pallas_call(
        functools.partial(_mm_bias_lrelu_linear_kernel, b_tile=b_tile),
        out_shape=jax.ShapeDtypeStruct((batch, 1, 1), jnp.float32),
        grid=(batch // b_tile,),
        in_specs=[
            pl.BlockSpec((rows_blk, k), lambda g: (g, 0)),
            pl.BlockSpec((k, cout), lambda g: (0, 0)),
            pl.BlockSpec((1, cout), lambda g: (0, 0)),
            pl.BlockSpec((1, 16, cout), lambda g: (0, 0, 0)),
            pl.BlockSpec((1, 1, 1), lambda g: (0, 0, 0)),
        ],
        out_specs=pl.BlockSpec((b_tile, 1, 1), lambda g: (g, 0, 0)),
        compiler_params=pltpu.CompilerParams(dimension_semantics=("parallel",)),
        cost_estimate=pl.CostEstimate(flops=flops, transcendentals=0,
                                      bytes_accessed=bytes_accessed),
    )(patches, w, b, wl, bl)
    return out.reshape(batch, 1)


# ----------------------------------------------------------------------------
# Wrapper-side patch construction (XLA-fused glue on small tensors).
# ----------------------------------------------------------------------------
def _row_tap_patches(a):
    """4x4/stride-2/pad-1 patches with the 4 row taps concatenated into K.
    NHWC (B,H,W,C) -> (B*Ho*Wo, 16C) bf16, K-order = (row tap i, col tap j, ci)."""
    B, H, W, C = a.shape
    Ho, Wo = H // 2, W // 2
    xp = jnp.pad(a, ((0, 0), (1, 1), (1, 1), (0, 0)))                # (B,H+2,W+2,C)
    xr = xp.reshape(B, H + 2, (W + 2) // 2, 2 * C)                   # width pairs
    xw = jnp.concatenate([xr[:, :, :Wo, :], xr[:, :, 1:Wo + 1, :]], axis=-1)  # cols 2wo..2wo+3
    ev = xw[:, 0::2]                                                 # padded rows 0,2,...
    od = xw[:, 1::2]                                                 # padded rows 1,3,...
    pat = jnp.concatenate([ev[:, :Ho], od[:, :Ho], ev[:, 1:Ho + 1], od[:, 1:Ho + 1]],
                          axis=-1)                                   # (B,Ho,Wo,16C)
    return pat.reshape(B * Ho * Wo, 16 * C).astype(jnp.bfloat16)


def _coupled_patches_l1(x):
    """Layer-1 patches with a 4x6 window covering a width-PAIR of outputs,
    so one K=72 dot emits both outputs -> lane-dense (..., 128) result.
    NHWC (B,32,32,3) -> (B*16*8, 72) bf16."""
    B, H, W, C = x.shape
    Ho, Wp = H // 2, W // 4
    xp = jnp.pad(x, ((0, 0), (1, 1), (1, 1), (0, 0)))                # (B,34,34,3)
    xr = xp.reshape(B, H + 2, (W + 2) // 2, 2 * C)                   # (B,34,17,6)
    a0 = xr[:, :, 0:2 * Wp:2]                                        # cols 4p,4p+1
    a1 = xr[:, :, 1:2 * Wp:2]                                        # cols 4p+2,4p+3
    a2 = xr[:, :, 2:2 * Wp + 1:2]                                    # cols 4p+4,4p+5
    xw6 = jnp.concatenate([a0, a1, a2], axis=-1)                     # (B,34,8,18)
    ev = xw6[:, 0::2]                                                # (B,17,8,18)
    od = xw6[:, 1::2]
    pat = jnp.concatenate([ev[:, :Ho], od[:, :Ho], ev[:, 1:Ho + 1], od[:, 1:Ho + 1]],
                          axis=-1)                                   # (B,16,8,72)
    return pat.reshape(B * Ho * Wp, 72).astype(jnp.bfloat16)


# ----------------------------------------------------------------------------
# Parameter preprocessing (hoisted out of the per-call path).
# ----------------------------------------------------------------------------
def prepare_params(p):
    # Layer 1: width-coupled weight (72, 128) -> both outputs of a width pair.
    w1t = jnp.transpose(p["w1"], (2, 3, 1, 0))                       # (i, j, ci, co)
    z = jnp.zeros((4, 2, 3, DIM), w1t.dtype)
    blk_even = jnp.concatenate([w1t, z], axis=1)                     # taps at j'=0..3
    blk_odd = jnp.concatenate([z, w1t], axis=1)                      # taps at j'=2..5
    w1c = jnp.concatenate([blk_even, blk_odd], axis=-1).reshape(4 * 6 * 3, 2 * DIM)
    b1c = jnp.concatenate([p["b1"], p["b1"]]).reshape(1, 2 * DIM)

    def tap_weight(w):                                               # (Co,Ci,4,4)->(16Ci,Co)
        co, ci, kh, kw = w.shape
        return jnp.transpose(w, (2, 3, 1, 0)).reshape(kh * kw * ci, co)

    # Final Linear weight permuted once from NCHW-flatten to the kernel's
    # (row = h*4+w, channel) order, shaped for the fused in-kernel reduction.
    wl = jnp.transpose(p["wl"].reshape(DIM * 4, 4, 4), (1, 2, 0)).reshape(1, 16, DIM * 4)

    return dict(
        w1c=w1c.astype(jnp.bfloat16), b1c=b1c.astype(jnp.float32),
        w2k=tap_weight(p["w2"]).astype(jnp.bfloat16),
        b2=p["b2"].reshape(1, -1).astype(jnp.float32),
        w3k=tap_weight(p["w3"]).astype(jnp.bfloat16),
        b3=p["b3"].reshape(1, -1).astype(jnp.float32),
        wl=wl.astype(jnp.float32),
        bl=p["bl"].reshape(1, 1, 1).astype(jnp.float32),
    )


def discriminator_forward(x_nchw, prep):
    B = x_nchw.shape[0]
    b_tile = _pick_b_tile(B)
    x = jnp.transpose(x_nchw, (0, 2, 3, 1)).astype(jnp.bfloat16)     # NHWC, bf16

    p1 = _coupled_patches_l1(x)                                      # (B*128, 72)
    y1 = _conv_matmul(p1, prep["w1c"], prep["b1c"],
                      rows_per_img=128, batch=B, b_tile=b_tile)      # (B*128, 128)
    y1 = y1.reshape(B, 16, 16, DIM)                                  # free reshape

    p2 = _row_tap_patches(y1)                                        # (B*64, 1024)
    y2 = _conv_matmul(p2, prep["w2k"], prep["b2"],
                      rows_per_img=64, batch=B, b_tile=b_tile)       # (B*64, 128)
    y2 = y2.reshape(B, 8, 8, 2 * DIM)

    p3 = _row_tap_patches(y2)                                        # (B*16, 2048)
    return _conv3_linear(p3, prep["w3k"], prep["b3"], prep["wl"], prep["bl"],
                         batch=B, b_tile=b_tile)                     # (B, 1)


# ----------------------------------------------------------------------------
# Pure-JAX reference (XLA conv, f32, original NCHW params) for correctness.
# ----------------------------------------------------------------------------
def reference_forward(x, params):
    def conv(x, w, b):
        y = jax.lax.conv_general_dilated(
            x, w, window_strides=(2, 2), padding=[(1, 1), (1, 1)],
            dimension_numbers=("NCHW", "OIHW", "NCHW"))
        y = y + b.reshape(1, -1, 1, 1)
        return jnp.where(y >= 0, y, NEG_SLOPE * y)

    h = conv(x, params["w1"], params["b1"])
    h = conv(h, params["w2"], params["b2"])
    h = conv(h, params["w3"], params["b3"])
    flat = h.reshape(h.shape[0], -1)
    return flat @ params["wl"].T + params["bl"]


def init_params(key):
    # Deterministic init mimicking PyTorch's default U(-1/sqrt(fan_in), +...)
    def uconv(k, c_out, c_in, ksz):
        bound = 1.0 / np.sqrt(c_in * ksz * ksz)
        kw, kb = jax.random.split(k)
        w = jax.random.uniform(kw, (c_out, c_in, ksz, ksz), jnp.float32, -bound, bound)
        b = jax.random.uniform(kb, (c_out,), jnp.float32, -bound, bound)
        return w, b

    k1, k2, k3, k4 = jax.random.split(key, 4)
    w1, b1 = uconv(k1, DIM, 3, 4)
    w2, b2 = uconv(k2, DIM * 2, DIM, 4)
    w3, b3 = uconv(k3, DIM * 4, DIM * 2, 4)
    bound = 1.0 / np.sqrt(DIM * 64)
    kw, kb = jax.random.split(k4)
    wl = jax.random.uniform(kw, (1, DIM * 64), jnp.float32, -bound, bound)
    bl = jax.random.uniform(kb, (1,), jnp.float32, -bound, bound)
    return dict(w1=w1, b1=b1, w2=w2, b2=b2, w3=w3, b3=b3, wl=wl, bl=bl)


if __name__ == "__main__":
    root = jax.random.PRNGKey(0)
    kx, kp = jax.random.split(root)

    B = 2
    x = jax.random.normal(kx, (B, 3, 32, 32), jnp.float32)   # NCHW, like PyTorch
    params = init_params(kp)
    prep = jax.block_until_ready(prepare_params(params))     # one-time prep

    out = jax.jit(discriminator_forward)(x, prep)
    out = jax.block_until_ready(out)
    assert out.shape == (B, 1) and out.dtype == jnp.float32

    ref = jax.block_until_ready(jax.jit(reference_forward)(x, params))
    np.testing.assert_allclose(np.asarray(out), np.asarray(ref), rtol=2e-2, atol=2e-2)

    print("KERNEL_OK")
</pallas_src>

<mosaic_0001>
module attributes {stable_mosaic.version = 11 : i64} {
  func.func @_mm_bias_lrelu_kernel(%arg0: i32, %arg1: memref<128x72xbf16, #tpu.memory_space<vmem>>, %arg2: memref<72x128xbf16, #tpu.memory_space<vmem>>, %arg3: memref<1x128xf32, #tpu.memory_space<vmem>>, %arg4: memref<128x128xbf16, #tpu.memory_space<vmem>>) attributes {dimension_semantics = [#tpu.dimension_semantics<parallel>], iteration_bounds = array<i64: 2>, scalar_prefetch = 0 : i64, scratch_operands = 0 : i64, tpu.core_type = #tpu.core_type<tc>, window_params = [{transform_indices = @transform_0, window_bounds = array<i64: 128, 72>}, {pipeline_mode = #tpu.pipeline_mode<synchronous>, transform_indices = @transform_1, window_bounds = array<i64: 72, 128>}, {pipeline_mode = #tpu.pipeline_mode<synchronous>, transform_indices = @transform_2, window_bounds = array<i64: 1, 128>}, {transform_indices = @transform_3, window_bounds = array<i64: 128, 128>}]} {
    %c0 = arith.constant 0 : index
    %c0_0 = arith.constant 0 : index
    %0 = vector.load %arg1[%c0, %c0_0] : memref<128x72xbf16, #tpu.memory_space<vmem>>, vector<128x72xbf16>
    %c0_1 = arith.constant 0 : index
    %c0_2 = arith.constant 0 : index
    %1 = vector.load %arg2[%c0_1, %c0_2] : memref<72x128xbf16, #tpu.memory_space<vmem>>, vector<72x128xbf16>
    %cst = arith.constant dense<0.000000e+00> : vector<128x128xf32>
    %2 = tpu.matmul %0, %1, %cst {dimension_numbers = #tpu.dot_dimension_numbers<[1], [0], [0], [1], [0, 0, 1, 1], [], []>} : vector<128x72xbf16>, vector<72x128xbf16>, vector<128x128xf32> -> vector<128x128xf32>
    %c0_3 = arith.constant 0 : index
    %c0_4 = arith.constant 0 : index
    %3 = vector.load %arg3[%c0_3, %c0_4] : memref<1x128xf32, #tpu.memory_space<vmem>>, vector<1x128xf32>
    %4 = vector.broadcast %3 : vector<1x128xf32> to vector<128x128xf32>
    %5 = arith.addf %2, %4 : vector<128x128xf32>
    %cst_5 = arith.constant 0.000000e+00 : f32
    %6 = vector.broadcast %cst_5 : f32 to vector<128x128xf32>
    %7 = arith.cmpf oge, %5, %6 : vector<128x128xf32>
    %cst_6 = arith.constant 0.00999999977 : f32
    %8 = vector.broadcast %cst_6 : f32 to vector<128x128xf32>
    %9 = arith.mulf %8, %5 : vector<128x128xf32>
    %10 = arith.select %7, %5, %9 : vector<128x128xi1>, vector<128x128xf32>
    %11 = arith.truncf %10 : vector<128x128xf32> to vector<128x128xbf16>
    %c0_7 = arith.constant 0 : index
    %c0_8 = arith.constant 0 : index
    %12 = vector.load %arg4[%c0_7, %c0_8] : memref<128x128xbf16, #tpu.memory_space<vmem>>, vector<128x128xbf16>
    tpu.vector_store %arg4[%c0_7, %c0_8], %11 {strides = array<i32>} : memref<128x128xbf16, #tpu.memory_space<vmem>>, vector<128x128xbf16>,
    return
  }
  func.func @transform_0(%arg0: i32) -> (i32, i32) {
    %c0_i32 = arith.constant 0 : i32
    %c0_i32_0 = arith.constant 0 : i32
    return %arg0, %c0_i32 : i32, i32
  }
  func.func @transform_1(%arg0: i32) -> (i32, i32) {
    %c0_i32 = arith.constant 0 : i32
    %c0_i32_0 = arith.constant 0 : i32
    %c0_i32_1 = arith.constant 0 : i32
    return %c0_i32, %c0_i32_0 : i32, i32
  }
  func.func @transform_2(%arg0: i32) -> (i32, i32) {
    %c0_i32 = arith.constant 0 : i32
    %c0_i32_0 = arith.constant 0 : i32
    %c0_i32_1 = arith.constant 0 : i32
    return %c0_i32, %c0_i32_0 : i32, i32
  }
  func.func @transform_3(%arg0: i32) -> (i32, i32) {
    %c0_i32 = arith.constant 0 : i32
    %c0_i32_0 = arith.constant 0 : i32
    return %arg0, %c0_i32 : i32, i32
  }
}

module attributes {stable_mosaic.version = 11 : i64} {
  func.func @_mm_bias_lrelu_kernel(%arg0: i32, %arg1: memref<64x1024xbf16, #tpu.memory_space<vmem>>, %arg2: memref<1024x128xbf16, #tpu.memory_space<vmem>>, %arg3: memref<1x128xf32, #tpu.memory_space<vmem>>, %arg4: memref<64x128xbf16, #tpu.memory_space<vmem>>) attributes {dimension_semantics = [#tpu.dimension_semantics<parallel>], iteration_bounds = array<i64: 2>, scalar_prefetch = 0 : i64, scratch_operands = 0 : i64, tpu.core_type = #tpu.core_type<tc>, window_params = [{transform_indices = @transform_0, window_bounds = array<i64: 64, 1024>}, {pipeline_mode = #tpu.pipeline_mode<synchronous>, transform_indices = @transform_1, window_bounds = array<i64: 1024, 128>}, {pipeline_mode = #tpu.pipeline_mode<synchronous>, transform_indices = @transform_2, window_bounds = array<i64: 1, 128>}, {transform_indices = @transform_3, window_bounds = array<i64: 64, 128>}]} {
    %c0 = arith.constant 0 : index
    %c0_0 = arith.constant 0 : index
    %0 = vector.load %arg1[%c0, %c0_0] : memref<64x1024xbf16, #tpu.memory_space<vmem>>, vector<64x1024xbf16>
    %c0_1 = arith.constant 0 : index
    %c0_2 = arith.constant 0 : index
    %1 = vector.load %arg2[%c0_1, %c0_2] : memref<1024x128xbf16, #tpu.memory_space<vmem>>, vector<1024x128xbf16>
    %cst = arith.constant dense<0.000000e+00> : vector<64x128xf32>
    %2 = tpu.matmul %0, %1, %cst {dimension_numbers = #tpu.dot_dimension_numbers<[1], [0], [0], [1], [0, 0, 1, 1], [], []>} : vector<64x1024xbf16>, vector<1024x128xbf16>, vector<64x128xf32> -> vector<64x128xf32>
    %c0_3 = arith.constant 0 : index
    %c0_4 = arith.constant 0 : index
    %3 = vector.load %arg3[%c0_3, %c0_4] : memref<1x128xf32, #tpu.memory_space<vmem>>, vector<1x128xf32>
    %4 = vector.broadcast %3 : vector<1x128xf32> to vector<64x128xf32>
    %5 = arith.addf %2, %4 : vector<64x128xf32>
    %cst_5 = arith.constant 0.000000e+00 : f32
    %6 = vector.broadcast %cst_5 : f32 to vector<64x128xf32>
    %7 = arith.cmpf oge, %5, %6 : vector<64x128xf32>
    %cst_6 = arith.constant 0.00999999977 : f32
    %8 = vector.broadcast %cst_6 : f32 to vector<64x128xf32>
    %9 = arith.mulf %8, %5 : vector<64x128xf32>
    %10 = arith.select %7, %5, %9 : vector<64x128xi1>, vector<64x128xf32>
    %11 = arith.truncf %10 : vector<64x128xf32> to vector<64x128xbf16>
    %c0_7 = arith.constant 0 : index
    %c0_8 = arith.constant 0 : index
    %12 = vector.load %arg4[%c0_7, %c0_8] : memref<64x128xbf16, #tpu.memory_space<vmem>>, vector<64x128xbf16>
    tpu.vector_store %arg4[%c0_7, %c0_8], %11 {strides = array<i32>} : memref<64x128xbf16, #tpu.memory_space<vmem>>, vector<64x128xbf16>,
    return
  }
  func.func @transform_0(%arg0: i32) -> (i32, i32) {
    %c0_i32 = arith.constant 0 : i32
    %c0_i32_0 = arith.constant 0 : i32
    return %arg0, %c0_i32 : i32, i32
  }
  func.func @transform_1(%arg0: i32) -> (i32, i32) {
    %c0_i32 = arith.constant 0 : i32
    %c0_i32_0 = arith.constant 0 : i32
    %c0_i32_1 = arith.constant 0 : i32
    return %c0_i32, %c0_i32_0 : i32, i32
  }
  func.func @transform_2(%arg0: i32) -> (i32, i32) {
    %c0_i32 = arith.constant 0 : i32
    %c0_i32_0 = arith.constant 0 : i32
    %c0_i32_1 = arith.constant 0 : i32
    return %c0_i32, %c0_i32_0 : i32, i32
  }
  func.func @transform_3(%arg0: i32) -> (i32, i32) {
    %c0_i32 = arith.constant 0 : i32
    %c0_i32_0 = arith.constant 0 : i32
    return %arg0, %c0_i32 : i32, i32
  }
}

module attributes {stable_mosaic.version = 11 : i64} {
  func.func @_mm_bias_lrelu_linear_kernel(%arg0: i32, %arg1: memref<16x2048xbf16, #tpu.memory_space<vmem>>, %arg2: memref<2048x256xbf16, #tpu.memory_space<vmem>>, %arg3: memref<1x256xf32, #tpu.memory_space<vmem>>, %arg4: memref<1x16x256xf32, #tpu.memory_space<vmem>>, %arg5: memref<1x1x1xf32, #tpu.memory_space<vmem>>, %arg6: memref<1x1x1xf32, #tpu.memory_space<vmem>>) attributes {dimension_semantics = [#tpu.dimension_semantics<parallel>], iteration_bounds = array<i64: 2>, scalar_prefetch = 0 : i64, scratch_operands = 0 : i64, tpu.core_type = #tpu.core_type<tc>, window_params = [{transform_indices = @transform_0, window_bounds = array<i64: 16, 2048>}, {pipeline_mode = #tpu.pipeline_mode<synchronous>, transform_indices = @transform_1, window_bounds = array<i64: 2048, 256>}, {pipeline_mode = #tpu.pipeline_mode<synchronous>, transform_indices = @transform_2, window_bounds = array<i64: 1, 256>}, {pipeline_mode = #tpu.pipeline_mode<synchronous>, transform_indices = @transform_3, window_bounds = array<i64: 1, 16, 256>}, {pipeline_mode = #tpu.pipeline_mode<synchronous>, transform_indices = @transform_4, window_bounds = array<i64: 1, 1, 1>}, {transform_indices = @transform_5, window_bounds = array<i64: 1, 1, 1>}]} {
    %c0 = arith.constant 0 : index
    %c0_0 = arith.constant 0 : index
    %0 = vector.load %arg1[%c0, %c0_0] : memref<16x2048xbf16, #tpu.memory_space<vmem>>, vector<16x2048xbf16>
    %c0_1 = arith.constant 0 : index
    %c0_2 = arith.constant 0 : index
    %1 = vector.load %arg2[%c0_1, %c0_2] : memref<2048x256xbf16, #tpu.memory_space<vmem>>, vector<2048x256xbf16>
    %cst = arith.constant dense<0.000000e+00> : vector<16x256xf32>
    %2 = tpu.matmul %0, %1, %cst {dimension_numbers = #tpu.dot_dimension_numbers<[1], [0], [0], [1], [0, 0, 1, 1], [], []>} : vector<16x2048xbf16>, vector<2048x256xbf16>, vector<16x256xf32> -> vector<16x256xf32>
    %c0_3 = arith.constant 0 : index
    %c0_4 = arith.constant 0 : index
    %3 = vector.load %arg3[%c0_3, %c0_4] : memref<1x256xf32, #tpu.memory_space<vmem>>, vector<1x256xf32>
    %4 = vector.broadcast %3 : vector<1x256xf32> to vector<16x256xf32>
    %5 = arith.addf %2, %4 : vector<16x256xf32>
    %cst_5 = arith.constant 0.000000e+00 : f32
    %6 = vector.broadcast %cst_5 : f32 to vector<16x256xf32>
    %7 = arith.cmpf oge, %5, %6 : vector<16x256xf32>
    %cst_6 = arith.constant 0.00999999977 : f32
    %8 = vector.broadcast %cst_6 : f32 to vector<16x256xf32>
    %9 = arith.mulf %8, %5 : vector<16x256xf32>
    %10 = arith.select %7, %5, %9 : vector<16x256xi1>, vector<16x256xf32>
    %11 = vector.shape_cast %10 : vector<16x256xf32> to vector<1x16x256xf32>
    %c0_7 = arith.constant 0 : index
    %c0_8 = arith.constant 0 : index
    %c0_9 = arith.constant 0 : index
    %12 = vector.load %arg4[%c0_7, %c0_8, %c0_9] : memref<1x16x256xf32, #tpu.memory_space<vmem>>, vector<1x16x256xf32>
    %13 = arith.mulf %11, %12 : vector<1x16x256xf32>
    %cst_10 = arith.constant dense<0.000000e+00> : vector<1x16xf32>
    %14 = vector.multi_reduction <add>, %13, %cst_10 [2] : vector<1x16x256xf32> to vector<1x16xf32>
    %15 = vector.shape_cast %14 : vector<1x16xf32> to vector<1x16x1xf32>
    %cst_11 = arith.constant dense<0.000000e+00> : vector<1x1xf32>
    %16 = vector.multi_reduction <add>, %15, %cst_11 [1] : vector<1x16x1xf32> to vector<1x1xf32>
    %17 = vector.shape_cast %16 : vector<1x1xf32> to vector<1x1x1xf32>
    %c0_12 = arith.constant 0 : index
    %c0_13 = arith.constant 0 : index
    %c0_14 = arith.constant 0 : index
    %18 = vector.load %arg5[%c0_12, %c0_13, %c0_14] : memref<1x1x1xf32, #tpu.memory_space<vmem>>, vector<1x1x1xf32>
    %19 = arith.addf %17, %18 : vector<1x1x1xf32>
    %c0_15 = arith.constant 0 : index
    %c0_16 = arith.constant 0 : index
    %c0_17 = arith.constant 0 : index
    %20 = vector.load %arg6[%c0_15, %c0_16, %c0_17] : memref<1x1x1xf32, #tpu.memory_space<vmem>>, vector<1x1x1xf32>
    tpu.vector_store %arg6[%c0_15, %c0_16, %c0_17], %19 {strides = array<i32>} : memref<1x1x1xf32, #tpu.memory_space<vmem>>, vector<1x1x1xf32>,
    return
  }
  func.func @transform_0(%arg0: i32) -> (i32, i32) {
    %c0_i32 = arith.constant 0 : i32
    %c0_i32_0 = arith.constant 0 : i32
    return %arg0, %c0_i32 : i32, i32
  }
  func.func @transform_1(%arg0: i32) -> (i32, i32) {
    %c0_i32 = arith.constant 0 : i32
    %c0_i32_0 = arith.constant 0 : i32
    %c0_i32_1 = arith.constant 0 : i32
    return %c0_i32, %c0_i32_0 : i32, i32
  }
  func.func @transform_2(%arg0: i32) -> (i32, i32) {
    %c0_i32 = arith.constant 0 : i32
    %c0_i32_0 = arith.constant 0 : i32
    %c0_i32_1 = arith.constant 0 : i32
    return %c0_i32, %c0_i32_0 : i32, i32
  }
  func.func @transform_3(%arg0: i32) -> (i32, i32, i32) {
    %c0_i32 = arith.constant 0 : i32
    %c0_i32_0 = arith.constant 0 : i32
    %c0_i32_1 = arith.constant 0 : i32
    %c0_i32_2 = arith.constant 0 : i32
    return %c0_i32, %c0_i32_0, %c0_i32_1 : i32, i32, i32
  }
  func.func @transform_4(%arg0: i32) -> (i32, i32, i32) {
    %c0_i32 = arith.constant 0 : i32
    %c0_i32_0 = arith.constant 0 : i32
    %c0_i32_1 = arith.constant 0 : i32
    %c0_i32_2 = arith.constant 0 : i32
    return %c0_i32, %c0_i32_0, %c0_i32_1 : i32, i32, i32
  }
  func.func @transform_5(%arg0: i32) -> (i32, i32, i32) {
    %c0_i32 = arith.constant 0 : i32
    %c0_i32_0 = arith.constant 0 : i32
    %c0_i32_1 = arith.constant 0 : i32
    return %arg0, %c0_i32, %c0_i32_0 : i32, i32, i32
  }
}

</mosaic_0001>

<bundles_post_ra>
// kernel: discriminator_forward.3
= control target key start
LH: loop header
LB: loop body
LE: loop exit
PB: predicated region body
PF: predicated region fallthrough
CT: control target
= control target key end

     0   :  { %s796_s12 = smov 0   ;;  %s878_s0 = inlined_call_operand.vmem [shape: bf16[256,72], index: 0, kind: input, shape index: {}]   ;;  %s879_s1 = inlined_call_operand.vmem [shape: bf16[72,128], index: 1, kind: input, shape index: {}]   ;;  %s880_s2 = inlined_call_operand.vmem [shape: f32[1,128], index: 2, kind: input, shape index: {}]   ;;  %s881_s3 = inlined_call_operand.vmem [shape: bf16[256,128], index: 3, kind: output, shape index: {}]  }
   0x1 LB: > { %s584_s13 = sadd.s32 4294967295, %s774_s12   ;;  %p588_p0 = scmp.ge.s32.totalorder %s774_s12, 1  ;;  %s774_s12 = sphi %s796_s12, %s13_s12  }
   0x2   : > { %p138_p1 = scmp.lt.s32.totalorder %s774_s12, 3 }
   0x4   : > { %p139_p2 = pnand %p588_p0, %p138_p1 }
   0x5   : > { %v755_v0 = vld [vmem:[%s879_s1] sm:$0xff] (!%p139_p2)   ;;  %v756_v1 = vld [vmem:[%s879_s1 + $0x8] sm:$0xff] (!%p139_p2)   ;;  %s589_s18 = sshll.u32 (!%p139_p2), %s584_s13, 4  ;;  %v757_v2 = vld [vmem:[%s879_s1 + $0x10] sm:$0xff] (!%p139_p2)   ;;  %vm274_vm0 = vcmask (!%p139_p2), 588800   ;;  %vm299_vm1 = vcmask (!%p139_p2), 1043456  }
   0x6   : > { %142 = sbr.rel (%p139_p2) target bundleno = 262 (0x106), region = 32  ;;  %709 = vmatprep.subr.bf16.mxu0 (!%p139_p2), %v755_v0  ;;  %735 = vmatprep.subr.bf16.mxu1 (!%p139_p2), %v755_v0  ;;  %p163_p3 = scmp.lt.s32.totalorder (!%p139_p2), %s589_s18, 31  ;;  %v758_v3 = vld [vmem:[%s879_s1 + $0x18] sm:$0xff] (!%p139_p2)   ;;  %v759_v6 = vld [vmem:[%s879_s1 + $0x20] ss:$0 sps:$4 sm:$0xff] (!%p139_p2)  }
   0x7   : > { %710 = vmatpush3.bf16.msra.mxu0 (!%p139_p2), %v755_v0  ;;  %740 = vmatpush3.bf16.msra.mxu1 (!%p139_p2), %v755_v0  ;;  %v301_v7 = vsel (!%p139_p2), %vm299_vm1, %v759_v6, 0  ;;  %v838_v14 = vld [vmem:[%s880_s2] ss:$0 sm:$0xff] (!%p139_p2) }
   0x8   : > { %711 = vmatprep.subr.bf16.mxu0 (!%p139_p2), %v756_v1  ;;  %736 = vmatprep.subr.bf16.mxu1 (!%p139_p2), %v756_v1 }
   0xb   : > { %712 = vmatpush3.bf16.msra.mxu0 (!%p139_p2), %v756_v1  ;;  %741 = vmatpush3.bf16.msra.mxu1 (!%p139_p2), %v756_v1 }
   0xc   : > { %713 = vmatprep.subr.bf16.mxu0 (!%p139_p2), %v757_v2  ;;  %737 = vmatprep.subr.bf16.mxu1 (!%p139_p2), %v757_v2 }
   0xd   : > { %s883_s18 = smov (!%p163_p3, %s589_s18), 31 }
   0xe   : > { %s590_s21 = sshll.u32 %s883_s18, 2 }
   0xf   : > { %s166_s26 = scalar_lea.vmem %s878_s0, %s590_s21  ;;  %714 = vmatpush3.bf16.msra.mxu0 %v757_v2  ;;  %742 = vmatpush3.bf16.msra.mxu1 %v757_v2  ;;  %s855_s6 = scalar_lea.vmem %s881_s3, %s590_s21 }
  0x10   : > { %v760_v4 = vld [vmem:[%s166_s26] sm:$0xff]   ;;  %715 = vmatprep.subr.bf16.mxu0 %v758_v3  ;;  %738 = vmatprep.subr.bf16.mxu1 %v758_v3  ;;  %v762_v8 = vld [vmem:[%s166_s26 + $0x8] sm:$0xff]   ;;  %v764_v10 = vld [vmem:[%s166_s26 + $0x10] sm:$0xff]  }
  0x11   : > { %v761_v5 = vld [vmem:[%s166_s26 + $0x20] sm:$0xff]   ;;  %719 = vmatprep.mubr.msk.bf16.mxu0 %vm274_vm0, %v760_v4  ;;  %v763_v9 = vld [vmem:[%s166_s26 + $0x28] sm:$0xff]   ;;  %v765_v11 = vld [vmem:[%s166_s26 + $0x30] sm:$0xff]  }
  0x12   : > { %727 = vmatprep.mubr.msk.bf16.mxu1 %vm274_vm0, %v761_v5  ;;  %v766_v12 = vld [vmem:[%s166_s26 + $0x18] sm:$0xff]  }
  0x13   : > { %716 = vmatpush3.bf16.msra.mxu0 %v758_v3  ;;  %743 = vmatpush3.bf16.msra.mxu1 %v758_v3  ;;  %v767_v13 = vld [vmem:[%s166_s26 + $0x38] sm:$0xff]  }
  0x14   : > { %745 = vmatprep.subr.msk.bf16.mxu0 %vm299_vm1, %v759_v6  ;;  %746 = vmatprep.subr.msk.bf16.mxu1 %vm299_vm1, %v759_v6 }
  0x17   : > { %718 = vmatpush3.bf16.msra.mxu0 %v301_v7  ;;  %744 = vmatpush3.bf16.msra.mxu1 %v301_v7 }
  0x1a   : > { %720 = vmatmul.mubr.msk.bf16.vlgmr.msra.gmra.mrb[0].mxu0 %vm274_vm0, %v762_v8  ;;  %728 = vmatmul.mubr.msk.bf16.vlgmr.msra.gmra.mrb[0].mxu1 %vm274_vm0, %v763_v9 }
  0x1b   : > { %723 = vmatprep.mubr.msk.bf16.mxu0 %vm274_vm0, %v764_v10  ;;  %731 = vmatprep.mubr.msk.bf16.mxu1 %vm274_vm0, %v765_v11 }
  0x22   : > { %724 = vmatmul.mubr.msk.bf16.gmra.mrb[4].mxu0 %vm274_vm0, %v766_v12  ;;  %732 = vmatmul.mubr.msk.bf16.gmra.mrb[4].mxu1 %vm274_vm0, %v767_v13 }
  0xed   : > { %v721_v15 = vpop.f32.mrb[0].mxu0  ;;  %v729_v16 = vpop.f32.mrb[0].mxu1 }
  0xee   : > { %v346_v17 = vadd.f32 %v721_v15, %v838_v14  ;;  %v378_v18 = vadd.f32 %v729_v16, %v838_v14  ;;  %v337_v19 = vpop.f32.mrb[1].mxu0  ;;  %v369_v20 = vpop.f32.mrb[1].mxu1 }
  0xef   : > { %v338_v21 = vadd.f32 %v838_v14, %v337_v19  ;;  %v370_v22 = vadd.f32 %v838_v14, %v369_v20  ;;  %v722_v23 = vpop.f32.mrb[2].mxu0  ;;  %v730_v24 = vpop.f32.mrb[2].mxu1 }
  0xf0   : > { %vm402_vm2 = vcmp.ge.f32.partialorder %v346_v17, 0.0  ;;  %v418_v25 = vmul.f32 0.01, %v346_v17  ;;  %vm410_vm3 = vcmp.ge.f32.partialorder %v378_v18, 0.0  ;;  %v426_v26 = vmul.f32 0.01, %v378_v18 }
  0xf1   : > { %vm400_vm4 = vcmp.ge.f32.partialorder %v338_v21, 0.0  ;;  %v416_v27 = vmul.f32 0.01, %v338_v21  ;;  %vm408_vm5 = vcmp.ge.f32.partialorder %v370_v22, 0.0  ;;  %v424_v28 = vmul.f32 0.01, %v370_v22 }
  0xf2   : > { %v349_v29 = vadd.f32 %v722_v23, %v838_v14  ;;  %v381_v30 = vadd.f32 %v730_v24, %v838_v14  ;;  %v340_v31 = vpop.f32.mrb[3].mxu0  ;;  %v372_v32 = vpop.f32.mrb[3].mxu1  ;;  %v434_v33 = vsel %vm402_vm2, %v346_v17, %v418_v25  ;;  %v442_v34 = vsel %vm410_vm3, %v378_v18, %v426_v26 }
  0xf3   : > { %v341_v35 = vadd.f32 %v838_v14, %v340_v31  ;;  %v373_v36 = vadd.f32 %v838_v14, %v372_v32  ;;  %v432_v41 = vsel %vm400_vm4, %v338_v21, %v416_v27  ;;  %v440_v42 = vsel %vm408_vm5, %v370_v22, %v424_v28 }
  0xf4   : > { %vm403_vm6 = vcmp.ge.f32.partialorder %v349_v29, 0.0  ;;  %v419_v37 = vmul.f32 0.01, %v349_v29  ;;  %vm411_vm7 = vcmp.ge.f32.partialorder %v381_v30, 0.0  ;;  %v427_v38 = vmul.f32 0.01, %v381_v30 }
  0xf5   : > { %vm401_vm8 = vcmp.ge.f32.partialorder %v341_v35, 0.0  ;;  %v417_v39 = vmul.f32 0.01, %v341_v35  ;;  %vm409_vm9 = vcmp.ge.f32.partialorder %v373_v36, 0.0  ;;  %v425_v40 = vmul.f32 0.01, %v373_v36 }
  0xf6   : > { %v435_v43 = vsel %vm403_vm6, %v349_v29, %v419_v37  ;;  %v443_v44 = vsel %vm411_vm7, %v381_v30, %v427_v38  ;;  %v725_v45 = vpop.f32.mrb[4].mxu0  ;;  %v733_v46 = vpop.f32.mrb[4].mxu1 }
  0xf7   : > { %v657_v47 = vpack.c.bf16 %v435_v43, %v434_v33  ;;  %v677_v48 = vpack.c.bf16 %v443_v44, %v442_v34  ;;  %v433_v49 = vsel %vm401_vm8, %v341_v35, %v417_v39  ;;  %v441_v50 = vsel %vm409_vm9, %v373_v36, %v425_v40  ;;  %v353_v51 = vpop.f32.mrb[5].mxu0  ;;  %v385_v52 = vpop.f32.mrb[5].mxu1 }
  0xf8   : > { %v652_v53 = vpack.c.bf16 %v433_v49, %v432_v41  ;;  %v672_v54 = vpack.c.bf16 %v441_v50, %v440_v42  ;;  %v362_v55 = vadd.f32 %v725_v45, %v838_v14  ;;  %v394_v56 = vadd.f32 %v733_v46, %v838_v14  ;;  %v726_v57 = vpop.f32.mrb[6].mxu0  ;;  %v734_v58 = vpop.f32.mrb[6].mxu1 }
  0xf9   : > { %689 = vst [vmem:[%s855_s6 + $0x8] sm:$0xff] %v657_v47   ;;  %693 = vst [vmem:[%s855_s6 + $0x28] sm:$0xff] %v677_v48   ;;  %v354_v59 = vadd.f32 %v838_v14, %v353_v51  ;;  %v386_v60 = vadd.f32 %v838_v14, %v385_v52  ;;  %v365_v61 = vadd.f32 %v726_v57, %v838_v14  ;;  %v356_v63 = vpop.f32.mrb[7].mxu0  ;;  %v388_v0 = vpop.f32.mrb[7].mxu1 }
  0xfa   : > { %v397_v62 = vadd.f32 %v734_v58, %v838_v14  ;;  %653 = vst [vmem:[%s855_s6] sm:$0xff] %v652_v53   ;;  %692 = vst [vmem:[%s855_s6 + $0x20] sm:$0xff] %v672_v54   ;;  %v422_v1 = vmul.f32 0.01, %v362_v55  ;;  %vm406_vm10 = vcmp.ge.f32.partialorder %v362_v55, 0.0  ;;  %v430_v2 = vmul.f32 0.01, %v394_v56 }
  0xfb   : > { %vm414_vm11 = vcmp.ge.f32.partialorder %v394_v56, 0.0  ;;  %vm404_vm12 = vcmp.ge.f32.partialorder %v354_v59, 0.0  ;;  %vm407_vm13 = vcmp.ge.f32.partialorder %v365_v61, 0.0  ;;  %v423_v3 = vmul.f32 0.01, %v365_v61 }
  0xfc   : > { %v420_v4 = vmul.f32 0.01, %v354_v59  ;;  %vm412_vm14 = vcmp.ge.f32.partialorder %v386_v60, 0.0  ;;  %vm415_vm15 = vcmp.ge.f32.partialorder %v397_v62, 0.0  ;;  %v431_v5 = vmul.f32 0.01, %v397_v62 }
  0xfd   : > { %v438_v6 = vsel %vm406_vm10, %v362_v55, %v422_v1  ;;  %v439_v7 = vsel %vm407_vm13, %v365_v61, %v423_v3  ;;  %v357_v8 = vadd.f32 %v838_v14, %v356_v63  ;;  %v389_v9 = vadd.f32 %v838_v14, %v388_v0 }
  0xfe   : > { %v446_v10 = vsel %vm414_vm11, %v394_v56, %v430_v2  ;;  %v428_v11 = vmul.f32 0.01, %v386_v60  ;;  %v667_v12 = vpack.c.bf16 %v439_v7, %v438_v6  ;;  %v447_v13 = vsel %vm415_vm15, %v397_v62, %v431_v5 }
  0xff   : > { %v687_v15 = vpack.c.bf16 %v447_v13, %v446_v10  ;;  %vm405_vm0 = vcmp.ge.f32.partialorder %v357_v8, 0.0  ;;  %v421_v16 = vmul.f32 0.01, %v357_v8  ;;  %vm413_vm1 = vcmp.ge.f32.partialorder %v389_v9, 0.0 }
 0x100   : > { %691 = vst [vmem:[%s855_s6 + $0x18] sm:$0xff] %v667_v12   ;;  %v429_v17 = vmul.f32 0.01, %v389_v9  ;;  %v436_v18 = vsel %vm404_vm12, %v354_v59, %v420_v4  ;;  %v444_v20 = vsel %vm412_vm14, %v386_v60, %v428_v11 }
 0x101   : > { %695 = vst [vmem:[%s855_s6 + $0x38] sm:$0xff] %v687_v15   ;;  %v437_v19 = vsel %vm405_vm0, %v357_v8, %v421_v16 }
 0x102   : > { %v662_v21 = vpack.c.bf16 %v437_v19, %v436_v18  ;;  %v445_v14 = vsel %vm413_vm1, %v389_v9, %v429_v17 }
 0x103   : > { %v682_v22 = vpack.c.bf16 %v445_v14, %v444_v20 }
 0x104   : > { %690 = vst [vmem:[%s855_s6 + $0x10] sm:$0xff] %v662_v21  }
 0x105   : > { %694 = vst [vmem:[%s855_s6 + $0x30] sm:$0xff] %v682_v22  }
 0x106 PF: > { %s13_s12 = sadd.s32 1, %s774_s12  }
 0x107   : > { %p10_p4 = scmp.ge.s32.totalorder %s13_s12, 4  }
 0x109   :  { %12 = sbr.rel (!%p10_p4) target bundleno = 1 (0x1), region = 62 }

// kernel: discriminator_forward.4
= control target key start
LH: loop header
LB: loop body
LE: loop exit
PB: predicated region body
PF: predicated region fallthrough
CT: control target
= control target key end

     0   :  { %s1678_s12 = smov 0   ;;  %s1957_s0 = inlined_call_operand.vmem [shape: bf16[128,1024], index: 0, kind: input, shape index: {}]   ;;  %s1958_s1 = inlined_call_operand.vmem [shape: bf16[1024,128], index: 1, kind: input, shape index: {}]   ;;  %s1959_s2 = inlined_call_operand.vmem [shape: f32[1,128], index: 2, kind: input, shape index: {}]   ;;  %s1960_s3 = inlined_call_operand.vmem [shape: bf16[128,128], index: 3, kind: output, shape index: {}]  }
   0x1 LB: > { %s1269_s13 = sadd.s32 4294967295, %s1656_s12   ;;  %p1273_p0 = scmp.ge.s32.totalorder %s1656_s12, 1  ;;  %s1656_s12 = sphi %s1678_s12, %s13_s12  }
   0x2   : > { %p139_p1 = scmp.lt.s32.totalorder %s1656_s12, 3 }
   0x4   : > { %p140_p2 = pnand %p1273_p0, %p139_p1 }
   0x5   : > { %v1586_v0 = vld [vmem:[%s1958_s1 + $0x40] sm:$0xff] (!%p140_p2)   ;;  %v1590_v4 = vld [vmem:[%s1958_s1 + $0x48] sm:$0xff] (!%p140_p2)   ;;  %v1594_v8 = vld [vmem:[%s1958_s1 + $0x50] sm:$0xff] (!%p140_p2)   ;;  %s1274_s21 = sshll.u32 (!%p140_p2), %s1269_s13, 3 }
   0x6   : > { %143 = sbr.rel (%p140_p2) target bundleno = 322 (0x142), region = 32  ;;  %v1587_v1 = vld [vmem:[%s1958_s1 + $0xc0] sm:$0xff] (!%p140_p2)   ;;  %1418 = vmatprep.subr.bf16.mxu0 (!%p140_p2), %v1586_v0  ;;  %v1591_v5 = vld [vmem:[%s1958_s1 + $0xc8] sm:$0xff] (!%p140_p2)   ;;  %v1595_v9 = vld [vmem:[%s1958_s1 + $0xd0] sm:$0xff] (!%p140_p2)   ;;  %p165_p3 = scmp.lt.s32.totalorder (!%p140_p2), %s1274_s21, 15 }
   0x7   : > { %v1588_v2 = vld [vmem:[%s1958_s1] sm:$0xff] (!%p140_p2)   ;;  %1458 = vmatprep.subr.bf16.mxu1 (!%p140_p2), %v1587_v1  ;;  %v1592_v6 = vld [vmem:[%s1958_s1 + $0x8] sm:$0xff] (!%p140_p2)   ;;  %v1596_v10 = vld [vmem:[%s1958_s1 + $0x10] sm:$0xff] (!%p140_p2)  }
   0x8   : > { %v1589_v3 = vld [vmem:[%s1958_s1 + $0x80] sm:$0xff] (!%p140_p2)   ;;  %1419 = vmatpush3.bf16.msra.mxu0 (!%p140_p2), %v1588_v2  ;;  %v1593_v7 = vld [vmem:[%s1958_s1 + $0x88] sm:$0xff] (!%p140_p2)   ;;  %v1597_v11 = vld [vmem:[%s1958_s1 + $0x90] sm:$0xff] (!%p140_p2)  }
   0x9   : > { %1459 = vmatpush3.bf16.msra.mxu1 (!%p140_p2), %v1589_v3  ;;  %1420 = vmatprep.subr.bf16.mxu0 (!%p140_p2), %v1590_v4  ;;  %v1598_v12 = vld [vmem:[%s1958_s1 + $0x58] sm:$0xff] (!%p140_p2)   ;;  %v1602_v16 = vld [vmem:[%s1958_s1 + $0x60] sm:$0xff] (!%p140_p2)   ;;  %v1606_v20 = vld [vmem:[%s1958_s1 + $0x68] sm:$0xff] (!%p140_p2)  }
   0xa   : > { %1460 = vmatprep.subr.bf16.mxu1 (!%p140_p2), %v1591_v5  ;;  %v1599_v13 = vld [vmem:[%s1958_s1 + $0xd8] sm:$0xff] (!%p140_p2)   ;;  %v1603_v17 = vld [vmem:[%s1958_s1 + $0xe0] sm:$0xff] (!%p140_p2)   ;;  %v1607_v21 = vld [vmem:[%s1958_s1 + $0xe8] sm:$0xff] (!%p140_p2)  }
   0xb   : > { %v1600_v14 = vld [vmem:[%s1958_s1 + $0x18] sm:$0xff] (!%p140_p2)   ;;  %v1604_v18 = vld [vmem:[%s1958_s1 + $0x20] sm:$0xff] (!%p140_p2)   ;;  %v1608_v22 = vld [vmem:[%s1958_s1 + $0x28] sm:$0xff] (!%p140_p2)  }
   0xc   : > { %1421 = vmatpush3.bf16.msra.mxu0 (!%p140_p2), %v1592_v6  ;;  %v1601_v15 = vld [vmem:[%s1958_s1 + $0x98] sm:$0xff] (!%p140_p2)   ;;  %v1605_v19 = vld [vmem:[%s1958_s1 + $0xa0] sm:$0xff] (!%p140_p2)   ;;  %v1609_v23 = vld [vmem:[%s1958_s1 + $0xa8] sm:$0xff] (!%p140_p2)  }
   0xd   : > { %1461 = vmatpush3.bf16.msra.mxu1 %v1593_v7  ;;  %1422 = vmatprep.subr.bf16.mxu0 %v1594_v8  ;;  %s1962_s21 = smov (!%p165_p3, %s1274_s21), 15  ;;  %v1610_v24 = vld [vmem:[%s1958_s1 + $0x70] sm:$0xff]   ;;  %v1614_v28 = vld [vmem:[%s1958_s1 + $0x78] sm:$0xff]   ;;  %v1618_v40 = vld [vmem:[%s1958_s1 + $0x140] sm:$0xff]  }
   0xe   : > { %1462 = vmatprep.subr.bf16.mxu1 %v1595_v9  ;;  %v1611_v25 = vld [vmem:[%s1958_s1 + $0xf0] sm:$0xff]   ;;  %s1386_s18 = sshll.u32 %s1962_s21, 5  ;;  %v1615_v29 = vld [vmem:[%s1958_s1 + $0xf8] sm:$0xff]   ;;  %v1619_v41 = vld [vmem:[%s1958_s1 + $0x1c0] sm:$0xff]  }
   0xf   : > { %v1612_v26 = vld [vmem:[%s1958_s1 + $0x30] sm:$0xff]   ;;  %s1784_s28 = scalar_lea.vmem %s1957_s0, %s1386_s18  ;;  %v1616_v30 = vld [vmem:[%s1958_s1 + $0x38] sm:$0xff]   ;;  %v1620_v42 = vld [vmem:[%s1958_s1 + $0x100] sm:$0xff]  }
  0x10   : > { %1423 = vmatpush3.bf16.msra.mxu0 %v1596_v10  ;;  %v1613_v27 = vld [vmem:[%s1958_s1 + $0xb0] sm:$0xff]   ;;  %v1617_v31 = vld [vmem:[%s1958_s1 + $0xb8] sm:$0xff]   ;;  %v178_v32 = vld [vmem:[%s1784_s28] sm:$0xff] }
  0x11   : > { %1463 = vmatpush3.bf16.msra.mxu1 %v1597_v11  ;;  %1424 = vmatprep.subr.bf16.mxu0 %v1598_v12  ;;  %v182_v33 = vld [vmem:[%s1784_s28 + $0x20] sm:$0xff]  ;;  %v179_v34 = vld [vmem:[%s1784_s28 + $0x8] sm:$0xff]  ;;  %v1626_v56 = vld [vmem:[%s1958_s1 + $0x150] sm:$0xff]  }
  0x12   : > { %1464 = vmatprep.subr.bf16.mxu1 %v1599_v13  ;;  %v1280_v35 = vcombine.low %v178_v32, %v182_v33  ;;  %v1281_v36 = vcombine.high %v178_v32, %v182_v33  ;;  %v183_v37 = vld [vmem:[%s1784_s28 + $0x28] sm:$0xff]  ;;  %v1621_v43 = vld [vmem:[%s1958_s1 + $0x180] sm:$0xff]   ;;  %v1627_v57 = vld [vmem:[%s1958_s1 + $0x1d0] sm:$0xff]  }
  0x13   : > { %v1282_v38 = vcombine.low %v179_v34, %v183_v37  ;;  %v1283_v39 = vcombine.high %v179_v34, %v183_v37  ;;  %v1622_v44 = vld [vmem:[%s1958_s1 + $0x148] sm:$0xff]   ;;  %v186_v48 = vld [vmem:[%s1784_s28 + $0x40] sm:$0xff]  ;;  %v1628_v58 = vld [vmem:[%s1958_s1 + $0x110] sm:$0xff]  }
  0x14   : > { %1425 = vmatpush3.bf16.msra.mxu0 %v1600_v14  ;;  %921 = vmatprep.mubr.bf16.mxu0 %v1281_v36  ;;  %v1623_v45 = vld [vmem:[%s1958_s1 + $0x1c8] sm:$0xff]   ;;  %v190_v49 = vld [vmem:[%s1784_s28 + $0x60] sm:$0xff]  ;;  %v1629_v59 = vld [vmem:[%s1958_s1 + $0x190] sm:$0xff]  }
  0x15   : > { %1465 = vmatpush3.bf16.msra.mxu1 %v1601_v15  ;;  %1426 = vmatprep.subr.bf16.mxu0 %v1602_v16  ;;  %v1624_v46 = vld [vmem:[%s1958_s1 + $0x108] sm:$0xff]   ;;  %v1289_v50 = vcombine.high %v186_v48, %v190_v49  ;;  %v1288_v53 = vcombine.low %v186_v48, %v190_v49  ;;  %v1630_v60 = vld [vmem:[%s1958_s1 + $0x158] sm:$0xff]   ;;  %v194_v0 = vld [vmem:[%s1784_s28 + $0x80] sm:$0xff] }
  0x16   : > { %1466 = vmatprep.subr.bf16.mxu1 %v1603_v17  ;;  %986 = vmatprep.mubr.bf16.mxu1 %v1283_v39  ;;  %v1625_v47 = vld [vmem:[%s1958_s1 + $0x188] sm:$0xff]   ;;  %v1631_v61 = vld [vmem:[%s1958_s1 + $0x1d8] sm:$0xff]   ;;  %v198_v1 = vld [vmem:[%s1784_s28 + $0xa0] sm:$0xff] }
  0x17   : > { %v187_v51 = vld [vmem:[%s1784_s28 + $0x48] sm:$0xff]  ;;  %v1632_v62 = vld [vmem:[%s1958_s1 + $0x118] sm:$0xff]   ;;  %v1297_v4 = vcombine.high %v194_v0, %v198_v1  ;;  %v1296_v6 = vcombine.low %v194_v0, %v198_v1  ;;  %v1634_v8 = vld [vmem:[%s1958_s1 + $0x160] sm:$0xff]  }
  0x18   : > { %1427 = vmatpush3.bf16.msra.mxu0 %v1604_v18  ;;  %v191_v52 = vld [vmem:[%s1784_s28 + $0x68] sm:$0xff]  ;;  %v1633_v63 = vld [vmem:[%s1958_s1 + $0x198] sm:$0xff]   ;;  %v1635_v9 = vld [vmem:[%s1958_s1 + $0x1e0] sm:$0xff]  }
  0x19   : > { %1467 = vmatpush3.bf16.msra.mxu1 %v1605_v19  ;;  %1428 = vmatprep.subr.bf16.mxu0 %v1606_v20  ;;  %v1291_v54 = vcombine.high %v187_v51, %v191_v52  ;;  %v1290_v55 = vcombine.low %v187_v51, %v191_v52  ;;  %v195_v2 = vld [vmem:[%s1784_s28 + $0x88] sm:$0xff]  ;;  %v1636_v10 = vld [vmem:[%s1958_s1 + $0x120] sm:$0xff]   ;;  %v180_v32 = vld [vmem:[%s1784_s28 + $0x10] sm:$0xff] }
  0x1a   : > { %1468 = vmatprep.subr.bf16.mxu1 %v1607_v21  ;;  %v199_v3 = vld [vmem:[%s1784_s28 + $0xa8] sm:$0xff]  ;;  %v1637_v11 = vld [vmem:[%s1958_s1 + $0x1a0] sm:$0xff]   ;;  %v184_v33 = vld [vmem:[%s1784_s28 + $0x30] sm:$0xff] }
  0x1b   : > { %v1299_v5 = vcombine.high %v195_v2, %v199_v3  ;;  %v1298_v7 = vcombine.low %v195_v2, %v199_v3  ;;  %v1638_v12 = vld [vmem:[%s1958_s1 + $0x168] sm:$0xff]   ;;  %v202_v16 = vld [vmem:[%s1784_s28 + $0xc0] sm:$0xff]  ;;  %v1284_v34 = vcombine.low %v180_v32, %v184_v33  ;;  %v181_v36 = vld [vmem:[%s1784_s28 + $0x18] sm:$0xff] }
  0x1c   : > { %1429 = vmatpush3.bf16.msra.mxu0 %v1608_v22  ;;  %v1639_v13 = vld [vmem:[%s1958_s1 + $0x1e8] sm:$0xff]   ;;  %v206_v17 = vld [vmem:[%s1784_s28 + $0xe0] sm:$0xff]  ;;  %v185_v37 = vld [vmem:[%s1784_s28 + $0x38] sm:$0xff] }
  0x1d   : > { %1469 = vmatpush3.bf16.msra.mxu1 %v1609_v23  ;;  %1430 = vmatprep.subr.bf16.mxu0 %v1610_v24  ;;  %v1640_v14 = vld [vmem:[%s1958_s1 + $0x128] sm:$0xff]   ;;  %v1305_v19 = vcombine.high %v202_v16, %v206_v17  ;;  %v1304_v21 = vcombine.low %v202_v16, %v206_v17  ;;  %v1642_v24 = vld [vmem:[%s1958_s1 + $0x170] sm:$0xff]   ;;  %v1286_v39 = vcombine.low %v181_v36, %v185_v37  ;;  %v197_v48 = vld [vmem:[%s1784_s28 + $0x98] sm:$0xff] }
  0x1e   : > { %1470 = vmatprep.subr.bf16.mxu1 %v1611_v25  ;;  %v1641_v15 = vld [vmem:[%s1958_s1 + $0x1a8] sm:$0xff]   ;;  %v1643_v25 = vld [vmem:[%s1958_s1 + $0x1f0] sm:$0xff]   ;;  %v201_v49 = vld [vmem:[%s1784_s28 + $0xb8] sm:$0xff] }
  0x1f   : > { %v203_v18 = vld [vmem:[%s1784_s28 + $0xc8] sm:$0xff]  ;;  %v1279_v2 = vld [vmem:[%s1959_s2] ss:$0 sm:$0xff] }
  0x20   : > { %1431 = vmatpush3.bf16.msra.mxu0 %v1612_v26  ;;  %v207_v20 = vld [vmem:[%s1784_s28 + $0xe8] sm:$0xff]  ;;  %v1644_v26 = vld [vmem:[%s1958_s1 + $0x130] sm:$0xff]  }
  0x21   : > { %1471 = vmatpush3.bf16.msra.mxu1 %v1613_v27  ;;  %1432 = vmatprep.subr.bf16.mxu0 %v1614_v28  ;;  %v1307_v22 = vcombine.high %v203_v18, %v207_v20  ;;  %v1306_v23 = vcombine.low %v203_v18, %v207_v20  ;;  %v1645_v27 = vld [vmem:[%s1958_s1 + $0x1b0] sm:$0xff]   ;;  %v1646_v28 = vld [vmem:[%s1958_s1 + $0x178] sm:$0xff]  }
  0x22   : > { %1472 = vmatprep.subr.bf16.mxu1 %v1615_v29  ;;  %v1647_v29 = vld [vmem:[%s1958_s1 + $0x1f8] sm:$0xff]  }
  0x24   : > { %1433 = vmatpush3.bf16.msra.mxu0 %v1616_v30  ;;  %v1648_v30 = vld [vmem:[%s1958_s1 + $0x138] sm:$0xff]  }
  0x25   : > { %1473 = vmatpush3.bf16.msra.mxu1 %v1617_v31  ;;  %1498 = vmatprep.subr.bf16.mxu0 %v1618_v40  ;;  %v1649_v31 = vld [vmem:[%s1958_s1 + $0x1b8] sm:$0xff]   ;;  %v1287_v40 = vcombine.high %v181_v36, %v185_v37 }
  0x26   : > { %1538 = vmatprep.subr.bf16.mxu1 %v1619_v41  ;;  %v192_v41 = vld [vmem:[%s1784_s28 + $0x70] sm:$0xff] }
  0x27   : > { %922 = vmatmul.mubr.bf16.vlgmr.msra.gmra.mrb[0].mxu0 %v1280_v35  ;;  %v1285_v35 = vcombine.high %v180_v32, %v184_v33 }
  0x28   : > { %987 = vmatmul.mubr.bf16.vlgmr.msra.gmra.mrb[0].mxu1 %v1282_v38  ;;  %1499 = vmatpush3.bf16.msra.mxu0 %v1620_v42  ;;  %v188_v38 = vld [vmem:[%s1784_s28 + $0x50] sm:$0xff]  ;;  %v189_v42 = vld [vmem:[%s1784_s28 + $0x58] sm:$0xff] }
  0x29   : > { %1539 = vmatpush3.bf16.msra.mxu1 %v1621_v43  ;;  %1500 = vmatprep.subr.bf16.mxu0 %v1622_v44  ;;  %v193_v43 = vld [vmem:[%s1784_s28 + $0x78] sm:$0xff]  ;;  %v1293_v44 = vcombine.high %v188_v38, %v192_v41 }
  0x2a   : > { %1540 = vmatprep.subr.bf16.mxu1 %v1623_v45  ;;  %929 = vmatprep.mubr.bf16.mxu0 %v1289_v50  ;;  %v1295_v45 = vcombine.high %v189_v42, %v193_v43  ;;  %v1292_v50 = vcombine.low %v188_v38, %v192_v41  ;;  %v1294_v51 = vcombine.low %v189_v42, %v193_v43 }
  0x2b   : > { %994 = vmatprep.mubr.bf16.mxu1 %v1291_v54  ;;  %v204_v54 = vld [vmem:[%s1784_s28 + $0xd0] sm:$0xff] }
  0x2c   : > { %1501 = vmatpush3.bf16.msra.mxu0 %v1624_v46  ;;  %v196_v46 = vld [vmem:[%s1784_s28 + $0x90] sm:$0xff] }
  0x2d   : > { %1541 = vmatpush3.bf16.msra.mxu1 %v1625_v47  ;;  %1502 = vmatprep.subr.bf16.mxu0 %v1626_v56  ;;  %v200_v47 = vld [vmem:[%s1784_s28 + $0xb0] sm:$0xff]  ;;  %v205_v56 = vld [vmem:[%s1784_s28 + $0xd8] sm:$0xff] }
  0x2e   : > { %1542 = vmatprep.subr.bf16.mxu1 %v1627_v57  ;;  %v1301_v52 = vcombine.high %v196_v46, %v200_v47  ;;  %v209_v57 = vld [vmem:[%s1784_s28 + $0xf8] sm:$0xff] }
  0x2f   : > { %930 = vmatmul.mubr.bf16.gmra.mrb[4].mxu0 %v1288_v53  ;;  %v1303_v53 = vcombine.high %v197_v48, %v201_v49 }
  0x30   : > { %995 = vmatmul.mubr.bf16.gmra.mrb[4].mxu1 %v1290_v55  ;;  %1503 = vmatpush3.bf16.msra.mxu0 %v1628_v58  ;;  %v208_v55 = vld [vmem:[%s1784_s28 + $0xf0] sm:$0xff]  ;;  %v1300_v58 = vcombine.low %v196_v46, %v200_v47  ;;  %s1278_s28 = sshll.u32 %s1962_s21, 2 }
  0x31   : > { %1543 = vmatpush3.bf16.msra.mxu1 %v1629_v59  ;;  %1504 = vmatprep.subr.bf16.mxu0 %v1630_v60  ;;  %v1302_v59 = vcombine.low %v197_v48, %v201_v49  ;;  %v1309_v60 = vcombine.high %v204_v54, %v208_v55  ;;  %s1942_s29 = scalar_lea.vmem %s1960_s3, %s1278_s28 }
  0x32   : > { %1544 = vmatprep.subr.bf16.mxu1 %v1631_v61  ;;  %937 = vmatprep.mubr.bf16.mxu0 %v1297_v4  ;;  %v1311_v61 = vcombine.high %v205_v56, %v209_v57 }
  0x33   : > { %1002 = vmatprep.mubr.bf16.mxu1 %v1299_v5 }
  0x34   : > { %1505 = vmatpush3.bf16.msra.mxu0 %v1632_v62  ;;  %v1308_v62 = vcombine.low %v204_v54, %v208_v55 }
  0x35   : > { %1545 = vmatpush3.bf16.msra.mxu1 %v1633_v63  ;;  %1506 = vmatprep.subr.bf16.mxu0 %v1634_v8  ;;  %v1310_v63 = vcombine.low %v205_v56, %v209_v57 }
  0x36   : > { %1546 = vmatprep.subr.bf16.mxu1 %v1635_v9 }
  0x37   : > { %938 = vmatmul.mubr.bf16.gmra.mrb[8].mxu0 %v1296_v6 }
  0x38   : > { %1003 = vmatmul.mubr.bf16.gmra.mrb[8].mxu1 %v1298_v7  ;;  %1507 = vmatpush3.bf16.msra.mxu0 %v1636_v10 }
  0x39   : > { %1547 = vmatpush3.bf16.msra.mxu1 %v1637_v11  ;;  %1508 = vmatprep.subr.bf16.mxu0 %v1638_v12 }
  0x3a   : > { %1548 = vmatprep.subr.bf16.mxu1 %v1639_v13  ;;  %945 = vmatprep.mubr.bf16.mxu0 %v1305_v19 }
  0x3b   : > { %1010 = vmatprep.mubr.bf16.mxu1 %v1307_v22 }
  0x3c   : > { %1509 = vmatpush3.bf16.msra.mxu0 %v1640_v14 }
  0x3d   : > { %1549 = vmatpush3.bf16.msra.mxu1 %v1641_v15  ;;  %1510 = vmatprep.subr.bf16.mxu0 %v1642_v24 }
  0x3e   : > { %1550 = vmatprep.subr.bf16.mxu1 %v1643_v25 }
  0x3f   : > { %946 = vmatmul.mubr.bf16.gmra.mrb[12].mxu0 %v1304_v21 }
  0x40   : > { %1011 = vmatmul.mubr.bf16.gmra.mrb[12].mxu1 %v1306_v23  ;;  %1511 = vmatpush3.bf16.msra.mxu0 %v1644_v26 }
  0x41   : > { %1551 = vmatpush3.bf16.msra.mxu1 %v1645_v27  ;;  %1512 = vmatprep.subr.bf16.mxu0 %v1646_v28 }
  0x42   : > { %1552 = vmatprep.subr.bf16.mxu1 %v1647_v29  ;;  %1051 = vmatprep.mubr.bf16.mxu0 %v1285_v35 }
  0x43   : > { %1116 = vmatprep.mubr.bf16.mxu1 %v1287_v40 }
  0x44   : > { %1513 = vmatpush3.bf16.msra.mxu0 %v1648_v30 }
  0x45   : > { %1553 = vmatpush3.bf16.msra.mxu1 %v1649_v31 }
  0x47   : > { %1052 = vmatmul.mubr.bf16.vlgmr.msra.gmra.mrb[16].mxu0 %v1284_v34 }
  0x48   : > { %1117 = vmatmul.mubr.bf16.vlgmr.msra.gmra.mrb[16].mxu1 %v1286_v39  ;;  %1059 = vmatprep.mubr.bf16.mxu0 %v1293_v44 }
  0x49   : > { %1124 = vmatprep.mubr.bf16.mxu1 %v1295_v45 }
  0x4f   : > { %1060 = vmatmul.mubr.bf16.gmra.mrb[20].mxu0 %v1292_v50 }
  0x50   : > { %1125 = vmatmul.mubr.bf16.gmra.mrb[20].mxu1 %v1294_v51  ;;  %1067 = vmatprep.mubr.bf16.mxu0 %v1301_v52 }
  0x51   : > { %1132 = vmatprep.mubr.bf16.mxu1 %v1303_v53 }
  0x57   : > { %1068 = vmatmul.mubr.bf16.gmra.mrb[24].mxu0 %v1300_v58 }
  0x58   : > { %1133 = vmatmul.mubr.bf16.gmra.mrb[24].mxu1 %v1302_v59  ;;  %1075 = vmatprep.mubr.bf16.mxu0 %v1309_v60 }
  0x59   : > { %1140 = vmatprep.mubr.bf16.mxu1 %v1311_v61 }
  0x5f   : > { %1076 = vmatmul.mubr.bf16.gmra.mrb[28].mxu0 %v1308_v62 }
  0x60   : > { %1141 = vmatmul.mubr.bf16.gmra.mrb[28].mxu1 %v1310_v63 }
  0xfa   : > { %v1434_v0 = vpop.f32.mrb[0].mxu0 }
  0xfb   : > { %v1474_v1 = vpop.f32.mrb[0].mxu1  ;;  %v1435_v3 = vpop.f32.mrb[1].mxu0 }
  0xfc   : > { %v1436_v4 = vadd.f32 %v1435_v3, %v1434_v0  ;;  %v1475_v5 = vpop.f32.mrb[1].mxu1  ;;  %v1437_v6 = vpop.f32.mrb[2].mxu0 }
  0xfd   : > { %v1476_v7 = vadd.f32 %v1475_v5, %v1474_v1  ;;  %v1477_v8 = vpop.f32.mrb[2].mxu1  ;;  %v1438_v9 = vpop.f32.mrb[3].mxu0 }
  0xfe   : > { %v924_v10 = vadd.f32 %v1436_v4, %v1279_v2  ;;  %v1439_v11 = vadd.f32 %v1438_v9, %v1437_v6  ;;  %v1478_v12 = vpop.f32.mrb[3].mxu1 }
  0xff   : > { %v1479_v13 = vadd.f32 %v1478_v12, %v1477_v8 }
 0x100   : > { %v989_v14 = vadd.f32 %v1476_v7, %v924_v10  ;;  %v927_v15 = vadd.f32 %v1439_v11, %v1279_v2 }
 0x102   : > { %v1923_v16 = vadd.f32 %v1479_v13, %v927_v15  ;;  %v1440_v17 = vpop.f32.mrb[4].mxu0 }
 0x103   : > { %v1480_v18 = vpop.f32.mrb[4].mxu1  ;;  %v1441_v19 = vpop.f32.mrb[5].mxu0 }
 0x104   : > { %v1442_v20 = vadd.f32 %v1441_v19, %v1440_v17  ;;  %v1481_v21 = vpop.f32.mrb[5].mxu1  ;;  %v1443_v22 = vpop.f32.mrb[6].mxu0 }
 0x105   : > { %v1482_v23 = vadd.f32 %v1481_v21, %v1480_v18  ;;  %v1483_v24 = vpop.f32.mrb[6].mxu1  ;;  %v1444_v25 = vpop.f32.mrb[7].mxu0 }
 0x106   : > { %v932_v26 = vadd.f32 %v1442_v20, %v1279_v2  ;;  %v1445_v27 = vadd.f32 %v1444_v25, %v1443_v22  ;;  %v1484_v28 = vpop.f32.mrb[7].mxu1 }
 0x107   : > { %v1485_v29 = vadd.f32 %v1484_v28, %v1483_v24 }
 0x108   : > { %v1925_v30 = vadd.f32 %v1482_v23, %v932_v26  ;;  %v935_v31 = vadd.f32 %v1445_v27, %v1279_v2 }
 0x10a   : > { %v1927_v32 = vadd.f32 %v1485_v29, %v935_v31  ;;  %v1446_v33 = vpop.f32.mrb[8].mxu0 }
 0x10b   : > { %v1486_v34 = vpop.f32.mrb[8].mxu1  ;;  %v1447_v35 = vpop.f32.mrb[9].mxu0 }
 0x10c   : > { %v1487_v36 = vpop.f32.mrb[9].mxu1  ;;  %v1448_v37 = vadd.f32 %v1447_v35, %v1446_v33  ;;  %v1449_v39 = vpop.f32.mrb[10].mxu0 }
 0x10d   : > { %v1488_v38 = vadd.f32 %v1487_v36, %v1486_v34  ;;  %v1489_v40 = vpop.f32.mrb[10].mxu1  ;;  %v1450_v41 = vpop.f32.mrb[11].mxu0 }
 0x10e   : > { %v1490_v42 = vpop.f32.mrb[11].mxu1  ;;  %v940_v43 = vadd.f32 %v1448_v37, %v1279_v2  ;;  %v1451_v44 = vadd.f32 %v1450_v41, %v1449_v39 }
 0x10f   : > { %v1491_v45 = vadd.f32 %v1490_v42, %v1489_v40 }
 0x110   : > { %v1929_v46 = vadd.f32 %v1488_v38, %v940_v43  ;;  %v943_v47 = vadd.f32 %v1451_v44, %v1279_v2 }
 0x112   : > { %v1931_v48 = vadd.f32 %v1491_v45, %v943_v47  ;;  %v1452_v49 = vpop.f32.mrb[12].mxu0 }
 0x113   : > { %v1492_v50 = vpop.f32.mrb[12].mxu1  ;;  %v1453_v51 = vpop.f32.mrb[13].mxu0 }
 0x114   : > { %v1454_v52 = vadd.f32 %v1453_v51, %v1452_v49  ;;  %v1493_v53 = vpop.f32.mrb[13].mxu1  ;;  %v1455_v54 = vpop.f32.mrb[14].mxu0 }
 0x115   : > { %v1494_v55 = vadd.f32 %v1493_v53, %v1492_v50  ;;  %v1495_v56 = vpop.f32.mrb[14].mxu1  ;;  %v1456_v57 = vpop.f32.mrb[15].mxu0 }
 0x116   : > { %v948_v58 = vadd.f32 %v1454_v52, %v1279_v2  ;;  %v1457_v59 = vadd.f32 %v1456_v57, %v1455_v54  ;;  %v1496_v60 = vpop.f32.mrb[15].mxu1 }
 0x117   : > { %v1497_v61 = vadd.f32 %v1496_v60, %v1495_v56 }
 0x118   : > { %v1933_v62 = vadd.f32 %v1494_v55, %v948_v58  ;;  %v951_v63 = vadd.f32 %v1457_v59, %v1279_v2 }
 0x11a   : > { %v1935_v0 = vadd.f32 %v1497_v61, %v951_v63  ;;  %v1514_v1 = vpop.f32.mrb[16].mxu0 }
 0x11b   : > { %v1554_v3 = vpop.f32.mrb[16].mxu1  ;;  %v1515_v4 = vpop.f32.mrb[17].mxu0 }
 0x11c   : > { %v1516_v5 = vadd.f32 %v1515_v4, %v1514_v1  ;;  %v1555_v6 = vpop.f32.mrb[17].mxu1  ;;  %v1517_v7 = vpop.f32.mrb[18].mxu0 }
 0x11d   : > { %v1556_v8 = vadd.f32 %v1555_v6, %v1554_v3  ;;  %v1557_v9 = vpop.f32.mrb[18].mxu1  ;;  %v1518_v10 = vpop.f32.mrb[19].mxu0 }
 0x11e   : > { %v1054_v11 = vadd.f32 %v1516_v5, %v989_v14  ;;  %v1519_v12 = vadd.f32 %v1518_v10, %v1517_v7  ;;  %v1558_v13 = vpop.f32.mrb[19].mxu1 }
 0x11f   : > { %v1559_v15 = vadd.f32 %v1558_v13, %v1557_v9 }
 0x120   : > { %v1119_v17 = vadd.f32 %v1556_v8, %v1054_v11  ;;  %v1057_v18 = vadd.f32 %v1519_v12, %v1923_v16 }
 0x122   : > { %v1157_v2 = vmul.f32 0.01, %v1119_v17  ;;  %v1122_v19 = vadd.f32 %v1559_v15, %v1057_v18  ;;  %v1520_v20 = vpop.f32.mrb[20].mxu0  ;;  %vm1149_vm0 = vcmp.ge.f32.partialorder %v1119_v17, 0.0 }
 0x123   : > { %v1560_v21 = vpop.f32.mrb[20].mxu1  ;;  %v1521_v22 = vpop.f32.mrb[21].mxu0 }
 0x124   : > { %vm1150_vm1 = vcmp.ge.f32.partialorder %v1122_v19, 0.0  ;;  %v1158_v23 = vmul.f32 0.01, %v1122_v19  ;;  %v1522_v24 = vadd.f32 %v1521_v22, %v1520_v20  ;;  %v1561_v25 = vpop.f32.mrb[21].mxu1  ;;  %v1523_v26 = vpop.f32.mrb[22].mxu0  ;;  %v1165_v29 = vsel %vm1149_vm0, %v1119_v17, %v1157_v2 }
 0x125   : > { %v1562_v27 = vadd.f32 %v1561_v25, %v1560_v21  ;;  %v1563_v14 = vpop.f32.mrb[22].mxu1  ;;  %v1524_v28 = vpop.f32.mrb[23].mxu0 }
 0x126   : > { %v1166_v16 = vsel %vm1150_vm1, %v1122_v19, %v1158_v23  ;;  %v1062_v31 = vadd.f32 %v1522_v24, %v1925_v30  ;;  %v1525_v33 = vadd.f32 %v1524_v28, %v1523_v26  ;;  %v1564_v34 = vpop.f32.mrb[23].mxu1 }
 0x127   : > { %v1398_v35 = vpack.c.bf16 %v1166_v16, %v1165_v29  ;;  %v1565_v36 = vadd.f32 %v1564_v34, %v1563_v14 }
 0x128   : > { %v1127_v37 = vadd.f32 %v1562_v27, %v1062_v31  ;;  %v1065_v38 = vadd.f32 %v1525_v33, %v1927_v32 }
 0x129   : > { %1399 = vst [vmem:[%s1942_s29] sm:$0xff] %v1398_v35  }
 0x12a   : > { %v1159_v39 = vmul.f32 0.01, %v1127_v37  ;;  %v1130_v40 = vadd.f32 %v1565_v36, %v1065_v38  ;;  %v1526_v41 = vpop.f32.mrb[24].mxu0  ;;  %vm1151_vm2 = vcmp.ge.f32.partialorder %v1127_v37, 0.0 }
 0x12b   : > { %v1566_v42 = vpop.f32.mrb[24].mxu1  ;;  %v1527_v43 = vpop.f32.mrb[25].mxu0 }
 0x12c   : > { %vm1152_vm3 = vcmp.ge.f32.partialorder %v1130_v40, 0.0  ;;  %v1160_v44 = vmul.f32 0.01, %v1130_v40  ;;  %v1528_v45 = vadd.f32 %v1527_v43, %v1526_v41  ;;  %v1567_v47 = vpop.f32.mrb[25].mxu1  ;;  %v1529_v30 = vpop.f32.mrb[26].mxu0  ;;  %v1167_v52 = vsel %vm1151_vm2, %v1127_v37, %v1159_v39 }
 0x12d   : > { %v1568_v49 = vadd.f32 %v1567_v47, %v1566_v42  ;;  %v1569_v50 = vpop.f32.mrb[26].mxu1  ;;  %v1530_v51 = vpop.f32.mrb[27].mxu0 }
 0x12e   : > { %v1168_v53 = vsel %vm1152_vm3, %v1130_v40, %v1160_v44  ;;  %v1070_v32 = vadd.f32 %v1528_v45, %v1929_v46  ;;  %v1531_v54 = vadd.f32 %v1530_v51, %v1529_v30  ;;  %v1570_v55 = vpop.f32.mrb[27].mxu1 }
 0x12f   : > { %v1403_v56 = vpack.c.bf16 %v1168_v53, %v1167_v52  ;;  %v1571_v57 = vadd.f32 %v1570_v55, %v1569_v50 }
 0x130   : > { %v1135_v58 = vadd.f32 %v1568_v49, %v1070_v32  ;;  %v1073_v59 = vadd.f32 %v1531_v54, %v1931_v48 }
 0x131   : > { %1415 = vst [vmem:[%s1942_s29 + $0x8] sm:$0xff] %v1403_v56  }
 0x132   : > { %v1161_v60 = vmul.f32 0.01, %v1135_v58  ;;  %v1138_v61 = vadd.f32 %v1571_v57, %v1073_v59  ;;  %v1532_v63 = vpop.f32.mrb[28].mxu0  ;;  %vm1153_vm4 = vcmp.ge.f32.partialorder %v1135_v58, 0.0 }
 0x133   : > { %v1572_v1 = vpop.f32.mrb[28].mxu1  ;;  %v1533_v3 = vpop.f32.mrb[29].mxu0 }
 0x134   : > { %vm1154_vm5 = vcmp.ge.f32.partialorder %v1138_v61, 0.0  ;;  %v1162_v4 = vmul.f32 0.01, %v1138_v61  ;;  %v1534_v5 = vadd.f32 %v1533_v3, %v1532_v63  ;;  %v1573_v6 = vpop.f32.mrb[29].mxu1  ;;  %v1535_v46 = vpop.f32.mrb[30].mxu0  ;;  %v1169_v10 = vsel %vm1153_vm4, %v1135_v58, %v1161_v60 }
 0x135   : > { %v1574_v7 = vadd.f32 %v1573_v6, %v1572_v1  ;;  %v1575_v8 = vpop.f32.mrb[30].mxu1  ;;  %v1536_v9 = vpop.f32.mrb[31].mxu0 }
 0x136   : > { %v1170_v11 = vsel %vm1154_vm5, %v1138_v61, %v1162_v4  ;;  %v1078_v48 = vadd.f32 %v1534_v5, %v1933_v62  ;;  %v1537_v12 = vadd.f32 %v1536_v9, %v1535_v46  ;;  %v1576_v13 = vpop.f32.mrb[31].mxu1 }
 0x137   : > { %v1408_v15 = vpack.c.bf16 %v1170_v11, %v1169_v10  ;;  %v1577_v17 = vadd.f32 %v1576_v13, %v1575_v8 }
 0x138   : > { %v1143_v18 = vadd.f32 %v1574_v7, %v1078_v48  ;;  %v1081_v2 = vadd.f32 %v1537_v12, %v1935_v0 }
 0x139   : > { %1416 = vst [vmem:[%s1942_s29 + $0x10] sm:$0xff] %v1408_v15  }
 0x13a   : > { %v1163_v19 = vmul.f32 0.01, %v1143_v18  ;;  %v1146_v20 = vadd.f32 %v1577_v17, %v1081_v2  ;;  %vm1155_vm6 = vcmp.ge.f32.partialorder %v1143_v18, 0.0 }
 0x13c   : > { %vm1156_vm7 = vcmp.ge.f32.partialorder %v1146_v20, 0.0  ;;  %v1164_v21 = vmul.f32 0.01, %v1146_v20  ;;  %v1171_v22 = vsel %vm1155_vm6, %v1143_v18, %v1163_v19 }
 0x13e   : > { %v1172_v23 = vsel %vm1156_vm7, %v1146_v20, %v1164_v21 }
 0x13f   : > { %v1413_v24 = vpack.c.bf16 %v1172_v23, %v1171_v22 }
 0x141   : > { %1417 = vst [vmem:[%s1942_s29 + $0x18] sm:$0xff] %v1413_v24  }
 0x142 PF: > { %s13_s12 = sadd.s32 1, %s1656_s12  }
 0x143   : > { %p10_p4 = scmp.ge.s32.totalorder %s13_s12, 4  }
 0x145   :  { %12 = sbr.rel (!%p10_p4) target bundleno = 1 (0x1), region = 62 }

// kernel: discriminator_forward.5
= control target key start
LH: loop header
LB: loop body
LE: loop exit
PB: predicated region body
PF: predicated region fallthrough
CT: control target
= control target key end

     0   :  { %s3048_s20 = smov 0   ;;  %s3919_s0 = inlined_call_operand.vmem [shape: bf16[32,2048], index: 0, kind: input, shape index: {}]   ;;  %s3920_s1 = inlined_call_operand.vmem [shape: bf16[2048,256], index: 1, kind: input, shape index: {}]   ;;  %s3921_s2 = inlined_call_operand.vmem [shape: f32[1,256], index: 2, kind: input, shape index: {}]   ;;  %s3922_s3 = inlined_call_operand.vmem [shape: f32[1,16,256], index: 3, kind: input, shape index: {}]   ;;  %s3923_s4 = inlined_call_operand.<no memory space> [shape: f32[1,1,1], index: 4, kind: input, shape index: {}]   ;;  %s3924_s5 = inlined_call_operand.vmem [shape: f32[2,1,1], index: 5, kind: output, shape index: {}]  }
   0x1   :  { %v10_v0 = vstv %s3923_s4 }
   0x2   :  { %11 = vst [vmem:[#allocation2] sm:$0x1] %v10_v0 }
   0x3 LB: > { %s3054_s21 = sadd.s32 4294967295, %s3013_s20   ;;  %p2304_p0 = scmp.ge.s32.totalorder %s3013_s20, 1  ;;  %s3013_s20 = sphi %s3048_s20, %s17_s20  }
   0x4   : > { %p191_p1 = scmp.lt.s32.totalorder %s3013_s20, 3 }
   0x6   : > { %p192_p2 = pnand %p2304_p0, %p191_p1 }
   0x7   : > { %v2623_v1 = vld [vmem:[%s3920_s1 + $0x4] ss:$8 sps:$4 sm:$0xff] (!%p192_p2)   ;;  %v2627_v3 = vld [vmem:[%s3920_s1] ss:$8 sps:$4 sm:$0xff] (!%p192_p2)   ;;  %v2629_v5 = vld [vmem:[%s3920_s1 + $0x14] ss:$8 sps:$4 sm:$0xff] (!%p192_p2)  }
   0x8   : > { %195 = sbr.rel (%p192_p2) target bundleno = 651 (0x28b), region = 40  ;;  %v2625_v2 = vld [vmem:[%s3920_s1 + $0x404] ss:$8 sps:$4 sm:$0xff] (!%p192_p2)   ;;  %1872 = vmatprep.subr.bf16.mxu1 (!%p192_p2), %v2623_v1  ;;  %v2628_v4 = vld [vmem:[%s3920_s1 + $0x400] ss:$8 sps:$4 sm:$0xff] (!%p192_p2)   ;;  %s2305_s8 = sshll.u32 (!%p192_p2), %s3054_s21, 1 }
   0x9   : > { %2044 = vmatprep.subr.bf16.mxu0 (!%p192_p2), %v2625_v2  ;;  %1873 = vmatpush1.bf16.msra.mxu1 (!%p192_p2), %v2627_v3  ;;  %v2631_v6 = vld [vmem:[%s3920_s1 + $0x414] ss:$8 sps:$4 sm:$0xff] (!%p192_p2)   ;;  %v2633_v7 = vld [vmem:[%s3920_s1 + $0x10] ss:$8 sps:$4 sm:$0xff] (!%p192_p2)   ;;  %v2635_v9 = vld [vmem:[%s3920_s1 + $0x24] ss:$8 sps:$4 sm:$0xff] (!%p192_p2)  }
   0xa   : > { %2045 = vmatpush1.bf16.msra.mxu0 (!%p192_p2), %v2628_v4  ;;  %1874 = vmatprep.subr.bf16.mxu1 (!%p192_p2), %v2629_v5  ;;  %v2634_v8 = vld [vmem:[%s3920_s1 + $0x410] ss:$8 sps:$4 sm:$0xff] (!%p192_p2)   ;;  %v2637_v10 = vld [vmem:[%s3920_s1 + $0x424] ss:$8 sps:$4 sm:$0xff] (!%p192_p2)   ;;  %v2639_v11 = vld [vmem:[%s3920_s1 + $0x20] ss:$8 sps:$4 sm:$0xff] (!%p192_p2)  }
   0xb   : > { %2046 = vmatprep.subr.bf16.mxu0 (!%p192_p2), %v2631_v6  ;;  %v2640_v12 = vld [vmem:[%s3920_s1 + $0x420] ss:$8 sps:$4 sm:$0xff] (!%p192_p2)   ;;  %v2641_v13 = vld [vmem:[%s3920_s1 + $0x34] ss:$8 sps:$4 sm:$0xff] (!%p192_p2)   ;;  %v2645_v15 = vld [vmem:[%s3920_s1 + $0x30] ss:$8 sps:$4 sm:$0xff] (!%p192_p2)  }
   0xc   : > { %v2643_v14 = vld [vmem:[%s3920_s1 + $0x434] ss:$8 sps:$4 sm:$0xff] (!%p192_p2)   ;;  %v2646_v16 = vld [vmem:[%s3920_s1 + $0x430] ss:$8 sps:$4 sm:$0xff] (!%p192_p2)   ;;  %v2647_v17 = vld [vmem:[%s3920_s1 + $0x44] ss:$8 sps:$4 sm:$0xff] (!%p192_p2)  }
   0xd   : > { %1875 = vmatpush1.bf16.msra.mxu1 (!%p192_p2), %v2633_v7  ;;  %v2649_v18 = vld [vmem:[%s3920_s1 + $0x444] ss:$8 sps:$4 sm:$0xff] (!%p192_p2)   ;;  %v2651_v19 = vld [vmem:[%s3920_s1 + $0x40] ss:$8 sps:$4 sm:$0xff] (!%p192_p2)   ;;  %v2653_v21 = vld [vmem:[%s3920_s1 + $0x54] ss:$8 sps:$4 sm:$0xff] (!%p192_p2)  }
   0xe   : > { %2047 = vmatpush1.bf16.msra.mxu0 (!%p192_p2), %v2634_v8  ;;  %1876 = vmatprep.subr.bf16.mxu1 (!%p192_p2), %v2635_v9  ;;  %v2652_v20 = vld [vmem:[%s3920_s1 + $0x440] ss:$8 sps:$4 sm:$0xff] (!%p192_p2)   ;;  %v2655_v22 = vld [vmem:[%s3920_s1 + $0x454] ss:$8 sps:$4 sm:$0xff] (!%p192_p2)   ;;  %v2657_v23 = vld [vmem:[%s3920_s1 + $0x50] ss:$8 sps:$4 sm:$0xff] (!%p192_p2)  }
   0xf   : > { %2048 = vmatprep.subr.bf16.mxu0 %v2637_v10  ;;  %v2658_v24 = vld [vmem:[%s3920_s1 + $0x450] ss:$8 sps:$4 sm:$0xff]   ;;  %v2659_v25 = vld [vmem:[%s3920_s1 + $0x64] ss:$8 sps:$4 sm:$0xff]   ;;  %v2663_v27 = vld [vmem:[%s3920_s1 + $0x60] ss:$8 sps:$4 sm:$0xff]  }
  0x10   : > { %v2661_v26 = vld [vmem:[%s3920_s1 + $0x464] ss:$8 sps:$4 sm:$0xff]   ;;  %v2664_v28 = vld [vmem:[%s3920_s1 + $0x460] ss:$8 sps:$4 sm:$0xff]   ;;  %v2665_v29 = vld [vmem:[%s3920_s1 + $0x74] ss:$8 sps:$4 sm:$0xff]  }
  0x11   : > { %1877 = vmatpush1.bf16.msra.mxu1 %v2639_v11  ;;  %v2667_v30 = vld [vmem:[%s3920_s1 + $0x474] ss:$8 sps:$4 sm:$0xff]   ;;  %v2669_v31 = vld [vmem:[%s3920_s1 + $0x70] ss:$8 sps:$4 sm:$0xff]   ;;  %v2671_v33 = vld [vmem:[%s3920_s1 + $0x84] ss:$8 sps:$4 sm:$0xff]  }
  0x12   : > { %2049 = vmatpush1.bf16.msra.mxu0 %v2640_v12  ;;  %1878 = vmatprep.subr.bf16.mxu1 %v2641_v13  ;;  %v2670_v32 = vld [vmem:[%s3920_s1 + $0x470] ss:$8 sps:$4 sm:$0xff]   ;;  %p219_p3 = scmp.lt.s32.totalorder %s2305_s8, 3  ;;  %v2673_v34 = vld [vmem:[%s3920_s1 + $0x484] ss:$8 sps:$4 sm:$0xff]   ;;  %p225_p4 = scmp.lt.s32.totalorder %s3054_s21, 1 }
  0x13   : > { %2050 = vmatprep.subr.bf16.mxu0 %v2643_v14  ;;  %v2675_v35 = vld [vmem:[%s3920_s1 + $0x80] ss:$8 sps:$4 sm:$0xff]   ;;  %v2677_v37 = vld [vmem:[%s3920_s1 + $0x94] ss:$8 sps:$4 sm:$0xff]   ;;  %v2681_v39 = vld [vmem:[%s3920_s1 + $0x90] ss:$8 sps:$4 sm:$0xff]  }
  0x14   : > { %v2676_v36 = vld [vmem:[%s3920_s1 + $0x480] ss:$8 sps:$4 sm:$0xff]   ;;  %s3926_s8 = smov (!%p219_p3, %s2305_s8), 3  ;;  %v2679_v38 = vld [vmem:[%s3920_s1 + $0x494] ss:$8 sps:$4 sm:$0xff]   ;;  %s3928_s21 = smov (!%p225_p4, %s3054_s21), 1 }
  0x15   : > { %1879 = vmatpush1.bf16.msra.mxu1 %v2645_v15  ;;  %v2682_v40 = vld [vmem:[%s3920_s1 + $0x490] ss:$8 sps:$4 sm:$0xff]   ;;  %v2683_v41 = vld [vmem:[%s3920_s1 + $0xa4] ss:$8 sps:$4 sm:$0xff]   ;;  %s2582_s7 = sshll.u32 %s3926_s8, 6  ;;  %s227_s10 = scalar_lea.vmem %s3924_s5, %s3928_s21  ;;  %vm2251_vm4 = vcmask 0  }
  0x16   : > { %2051 = vmatpush1.bf16.msra.mxu0 %v2646_v16  ;;  %1880 = vmatprep.subr.bf16.mxu1 %v2647_v17  ;;  %v2685_v42 = vld [vmem:[%s3920_s1 + $0x4a4] ss:$8 sps:$4 sm:$0xff]   ;;  %v2687_v43 = vld [vmem:[%s3920_s1 + $0xa0] ss:$8 sps:$4 sm:$0xff]   ;;  %s3194_s17 = scalar_lea.vmem %s3919_s0, %s2582_s7  ;;  %v2689_v45 = vld [vmem:[%s3920_s1 + $0xb4] ss:$8 sps:$4 sm:$0xff]  }
  0x17   : > { %2052 = vmatprep.subr.bf16.mxu0 %v2649_v18  ;;  %v2688_v44 = vld [vmem:[%s3920_s1 + $0x4a0] ss:$8 sps:$4 sm:$0xff]   ;;  %v2691_v46 = vld [vmem:[%s3920_s1 + $0x4b4] ss:$8 sps:$4 sm:$0xff]   ;;  %v2693_v47 = vld [vmem:[%s3920_s1 + $0xb0] ss:$8 sps:$4 sm:$0xff]  }
  0x18   : > { %v2694_v48 = vld [vmem:[%s3920_s1 + $0x4b0] ss:$8 sps:$4 sm:$0xff]   ;;  %v228_v49 = vld [vmem:[%s3194_s17] sm:$0xff]  ;;  %v2701_v59 = vld [vmem:[%s3920_s1 + $0xd4] ss:$8 sps:$4 sm:$0xff]  }
  0x19   : > { %1881 = vmatpush1.bf16.msra.mxu1 %v2651_v19  ;;  %v236_v50 = vld [vmem:[%s3194_s17 + $0x40] sm:$0xff]  ;;  %v2703_v60 = vld [vmem:[%s3920_s1 + $0x4d4] ss:$8 sps:$4 sm:$0xff]   ;;  %v2705_v61 = vld [vmem:[%s3920_s1 + $0xd0] ss:$8 sps:$4 sm:$0xff]  }
  0x1a   : > { %2053 = vmatpush1.bf16.msra.mxu0 %v2652_v20  ;;  %1882 = vmatprep.subr.bf16.mxu1 %v2653_v21  ;;  %v2695_v51 = vld [vmem:[%s3920_s1 + $0xc4] ss:$8 sps:$4 sm:$0xff]   ;;  %v2309_v53 = vcombine.high %v228_v49, %v236_v50  ;;  %v2699_v57 = vld [vmem:[%s3920_s1 + $0xc0] ss:$8 sps:$4 sm:$0xff]   ;;  %v2706_v62 = vld [vmem:[%s3920_s1 + $0x4d0] ss:$8 sps:$4 sm:$0xff]   ;;  %v2308_v9 = vcombine.low %v228_v49, %v236_v50 }
  0x1b   : > { %2054 = vmatprep.subr.bf16.mxu0 %v2655_v22  ;;  %v2697_v52 = vld [vmem:[%s3920_s1 + $0x4c4] ss:$8 sps:$4 sm:$0xff]   ;;  %v2700_v58 = vld [vmem:[%s3920_s1 + $0x4c0] ss:$8 sps:$4 sm:$0xff]   ;;  %v2713_v3 = vld [vmem:[%s3920_s1 + $0xf4] ss:$8 sps:$4 sm:$0xff]  }
  0x1c   : > { %v232_v54 = vld [vmem:[%s3194_s17 + $0x20] sm:$0xff]  ;;  %1904 = vmatprep.mubr.bf16.mxu1 %v2309_v53  ;;  %v2715_v4 = vld [vmem:[%s3920_s1 + $0x4f4] ss:$8 sps:$4 sm:$0xff]   ;;  %v2717_v5 = vld [vmem:[%s3920_s1 + $0xf0] ss:$8 sps:$4 sm:$0xff]  }
  0x1d   : > { %1883 = vmatpush1.bf16.msra.mxu1 %v2657_v23  ;;  %v240_v55 = vld [vmem:[%s3194_s17 + $0x60] sm:$0xff]  ;;  %v2718_v6 = vld [vmem:[%s3920_s1 + $0x4f0] ss:$8 sps:$4 sm:$0xff]   ;;  %v2727_v13 = vld [vmem:[%s3920_s1 + $0x114] ss:$8 sps:$4 sm:$0xff]  }
  0x1e   : > { %2055 = vmatpush1.bf16.msra.mxu0 %v2658_v24  ;;  %1884 = vmatprep.subr.bf16.mxu1 %v2659_v25  ;;  %v2317_v56 = vcombine.high %v232_v54, %v240_v55  ;;  %v2707_v63 = vld [vmem:[%s3920_s1 + $0xe4] ss:$8 sps:$4 sm:$0xff]   ;;  %v2711_v1 = vld [vmem:[%s3920_s1 + $0xe0] ss:$8 sps:$4 sm:$0xff]   ;;  %v2316_v11 = vcombine.low %v232_v54, %v240_v55  ;;  %v2730_v14 = vld [vmem:[%s3920_s1 + $0x514] ss:$8 sps:$4 sm:$0xff]  }
  0x1f   : > { %2056 = vmatprep.subr.bf16.mxu0 %v2661_v26  ;;  %v2709_v0 = vld [vmem:[%s3920_s1 + $0x4e4] ss:$8 sps:$4 sm:$0xff]   ;;  %v2712_v2 = vld [vmem:[%s3920_s1 + $0x4e0] ss:$8 sps:$4 sm:$0xff]   ;;  %v2725_v15 = vld [vmem:[%s3920_s1 + $0x110] ss:$8 sps:$4 sm:$0xff]  }
  0x20   : > { %2076 = vmatprep.mubr.bf16.mxu0 %v2317_v56  ;;  %v2721_v7 = vld [vmem:[%s3920_s1 + $0x104] ss:$8 sps:$4 sm:$0xff]   ;;  %v2719_v10 = vld [vmem:[%s3920_s1 + $0x100] ss:$8 sps:$4 sm:$0xff]   ;;  %v2728_v16 = vld [vmem:[%s3920_s1 + $0x510] ss:$8 sps:$4 sm:$0xff]  }
  0x21   : > { %1885 = vmatpush1.bf16.msra.mxu1 %v2663_v27  ;;  %v2724_v8 = vld [vmem:[%s3920_s1 + $0x504] ss:$8 sps:$4 sm:$0xff]   ;;  %v2722_v12 = vld [vmem:[%s3920_s1 + $0x500] ss:$8 sps:$4 sm:$0xff]   ;;  %v2739_v21 = vld [vmem:[%s3920_s1 + $0x134] ss:$8 sps:$4 sm:$0xff]  }
  0x22   : > { %2057 = vmatpush1.bf16.msra.mxu0 %v2664_v28  ;;  %1886 = vmatprep.subr.bf16.mxu1 %v2665_v29  ;;  %v2733_v17 = vld [vmem:[%s3920_s1 + $0x124] ss:$8 sps:$4 sm:$0xff]   ;;  %v2731_v19 = vld [vmem:[%s3920_s1 + $0x120] ss:$8 sps:$4 sm:$0xff]   ;;  %v2742_v22 = vld [vmem:[%s3920_s1 + $0x534] ss:$8 sps:$4 sm:$0xff]  }
  0x23   : > { %2058 = vmatprep.subr.bf16.mxu0 %v2667_v30  ;;  %v2736_v18 = vld [vmem:[%s3920_s1 + $0x524] ss:$8 sps:$4 sm:$0xff]   ;;  %v2734_v20 = vld [vmem:[%s3920_s1 + $0x520] ss:$8 sps:$4 sm:$0xff]   ;;  %v2737_v23 = vld [vmem:[%s3920_s1 + $0x130] ss:$8 sps:$4 sm:$0xff]  }
  0x24   : > { %v2740_v24 = vld [vmem:[%s3920_s1 + $0x530] ss:$8 sps:$4 sm:$0xff]   ;;  %v2745_v25 = vld [vmem:[%s3920_s1 + $0x144] ss:$8 sps:$4 sm:$0xff]   ;;  %v2743_v27 = vld [vmem:[%s3920_s1 + $0x140] ss:$8 sps:$4 sm:$0xff]  }
  0x25   : > { %1887 = vmatpush1.bf16.msra.mxu1 %v2669_v31  ;;  %v2748_v26 = vld [vmem:[%s3920_s1 + $0x544] ss:$8 sps:$4 sm:$0xff]   ;;  %v2746_v28 = vld [vmem:[%s3920_s1 + $0x540] ss:$8 sps:$4 sm:$0xff]   ;;  %v2751_v29 = vld [vmem:[%s3920_s1 + $0x154] ss:$8 sps:$4 sm:$0xff]  }
  0x26   : > { %2059 = vmatpush1.bf16.msra.mxu0 %v2670_v32  ;;  %1888 = vmatprep.subr.bf16.mxu1 %v2671_v33  ;;  %v2754_v30 = vld [vmem:[%s3920_s1 + $0x554] ss:$8 sps:$4 sm:$0xff]   ;;  %v2749_v31 = vld [vmem:[%s3920_s1 + $0x150] ss:$8 sps:$4 sm:$0xff]   ;;  %v2757_v33 = vld [vmem:[%s3920_s1 + $0x164] ss:$8 sps:$4 sm:$0xff]  }
  0x27   : > { %2060 = vmatprep.subr.bf16.mxu0 %v2673_v34  ;;  %v2752_v32 = vld [vmem:[%s3920_s1 + $0x550] ss:$8 sps:$4 sm:$0xff]   ;;  %v2760_v34 = vld [vmem:[%s3920_s1 + $0x564] ss:$8 sps:$4 sm:$0xff]   ;;  %v2767_v49 = vld [vmem:[%s3920_s1 + $0x180] ss:$8 sps:$4 sm:$0xff]  }
  0x28   : > { %v2770_v50 = vld [vmem:[%s3920_s1 + $0x580] ss:$8 sps:$4 sm:$0xff]   ;;  %v2773_v53 = vld [vmem:[%s3920_s1 + $0x190] ss:$8 sps:$4 sm:$0xff]   ;;  %v2781_v55 = vld [vmem:[%s3920_s1 + $0x1a4] ss:$8 sps:$4 sm:$0xff]  }
  0x29   : > { %1889 = vmatpush1.bf16.msra.mxu1 %v2675_v35  ;;  %v2755_v35 = vld [vmem:[%s3920_s1 + $0x160] ss:$8 sps:$4 sm:$0xff]   ;;  %v2776_v54 = vld [vmem:[%s3920_s1 + $0x590] ss:$8 sps:$4 sm:$0xff]   ;;  %v2784_v56 = vld [vmem:[%s3920_s1 + $0x5a4] ss:$8 sps:$4 sm:$0xff]  }
  0x2a   : > { %2061 = vmatpush1.bf16.msra.mxu0 %v2676_v36  ;;  %1890 = vmatprep.subr.bf16.mxu1 %v2677_v37  ;;  %v2758_v36 = vld [vmem:[%s3920_s1 + $0x560] ss:$8 sps:$4 sm:$0xff]  }
  0x2b   : > { %2062 = vmatprep.subr.bf16.mxu0 %v2679_v38  ;;  %v3345_v37 = vld [vmem:[%s3194_s17 + $0x8] sm:$0xff] }
  0x2c   : > { %v3348_v38 = vld [vmem:[%s3194_s17 + $0x48] sm:$0xff] }
  0x2d   : > { %1891 = vmatpush1.bf16.msra.mxu1 %v2681_v39  ;;  %v2763_v39 = vld [vmem:[%s3920_s1 + $0x174] ss:$8 sps:$4 sm:$0xff]  }
  0x2e   : > { %2063 = vmatpush1.bf16.msra.mxu0 %v2682_v40  ;;  %1892 = vmatprep.subr.bf16.mxu1 %v2683_v41  ;;  %v2766_v40 = vld [vmem:[%s3920_s1 + $0x574] ss:$8 sps:$4 sm:$0xff]   ;;  %v2311_v41 = vcombine.high %v3345_v37, %v3348_v38 }
  0x2f   : > { %2064 = vmatprep.subr.bf16.mxu0 %v2685_v42  ;;  %v3359_v42 = vld [vmem:[%s3194_s17 + $0x28] sm:$0xff] }
  0x31   : > { %1893 = vmatpush1.bf16.msra.mxu1 %v2687_v43  ;;  %v3362_v43 = vld [vmem:[%s3194_s17 + $0x68] sm:$0xff] }
  0x32   : > { %2065 = vmatpush1.bf16.msra.mxu0 %v2688_v44  ;;  %1894 = vmatprep.subr.bf16.mxu1 %v2689_v45  ;;  %v2319_v44 = vcombine.high %v3359_v42, %v3362_v43  ;;  %v2761_v45 = vld [vmem:[%s3920_s1 + $0x170] ss:$8 sps:$4 sm:$0xff]  }
  0x33   : > { %2066 = vmatprep.subr.bf16.mxu0 %v2691_v46  ;;  %v2764_v46 = vld [vmem:[%s3920_s1 + $0x570] ss:$8 sps:$4 sm:$0xff]  }
  0x35   : > { %1895 = vmatpush1.bf16.msra.mxu1 %v2693_v47  ;;  %v2769_v47 = vld [vmem:[%s3920_s1 + $0x184] ss:$8 sps:$4 sm:$0xff]  }
  0x36   : > { %2067 = vmatpush1.bf16.msra.mxu0 %v2694_v48  ;;  %1896 = vmatprep.subr.bf16.mxu1 %v2695_v51  ;;  %v2772_v48 = vld [vmem:[%s3920_s1 + $0x584] ss:$8 sps:$4 sm:$0xff]   ;;  %v2775_v51 = vld [vmem:[%s3920_s1 + $0x194] ss:$8 sps:$4 sm:$0xff]  }
  0x37   : > { %2068 = vmatprep.subr.bf16.mxu0 %v2697_v52  ;;  %v2778_v52 = vld [vmem:[%s3920_s1 + $0x594] ss:$8 sps:$4 sm:$0xff]  }
  0x39   : > { %1897 = vmatpush1.bf16.msra.mxu1 %v2699_v57  ;;  %v2779_v57 = vld [vmem:[%s3920_s1 + $0x1a0] ss:$8 sps:$4 sm:$0xff]  }
  0x3a   : > { %2069 = vmatpush1.bf16.msra.mxu0 %v2700_v58  ;;  %1898 = vmatprep.subr.bf16.mxu1 %v2701_v59  ;;  %v2782_v58 = vld [vmem:[%s3920_s1 + $0x5a0] ss:$8 sps:$4 sm:$0xff]   ;;  %v2787_v59 = vld [vmem:[%s3920_s1 + $0x1b4] ss:$8 sps:$4 sm:$0xff]  }
  0x3b   : > { %2070 = vmatprep.subr.bf16.mxu0 %v2703_v60  ;;  %v2790_v60 = vld [vmem:[%s3920_s1 + $0x5b4] ss:$8 sps:$4 sm:$0xff]  }
  0x3d   : > { %1899 = vmatpush1.bf16.msra.mxu1 %v2705_v61  ;;  %v2785_v61 = vld [vmem:[%s3920_s1 + $0x1b0] ss:$8 sps:$4 sm:$0xff]  }
  0x3e   : > { %2071 = vmatpush1.bf16.msra.mxu0 %v2706_v62  ;;  %1900 = vmatprep.subr.bf16.mxu1 %v2707_v63  ;;  %v2788_v62 = vld [vmem:[%s3920_s1 + $0x5b0] ss:$8 sps:$4 sm:$0xff]   ;;  %v2793_v63 = vld [vmem:[%s3920_s1 + $0x1c4] ss:$8 sps:$4 sm:$0xff]  }
  0x3f   : > { %2072 = vmatprep.subr.bf16.mxu0 %v2709_v0  ;;  %v2796_v0 = vld [vmem:[%s3920_s1 + $0x5c4] ss:$8 sps:$4 sm:$0xff]  }
  0x41   : > { %1901 = vmatpush1.bf16.msra.mxu1 %v2711_v1  ;;  %v2791_v1 = vld [vmem:[%s3920_s1 + $0x1c0] ss:$8 sps:$4 sm:$0xff]  }
  0x42   : > { %2073 = vmatpush1.bf16.msra.mxu0 %v2712_v2  ;;  %1902 = vmatprep.subr.bf16.mxu1 %v2713_v3  ;;  %v2794_v2 = vld [vmem:[%s3920_s1 + $0x5c0] ss:$8 sps:$4 sm:$0xff]   ;;  %v2799_v3 = vld [vmem:[%s3920_s1 + $0x1d4] ss:$8 sps:$4 sm:$0xff]  }
  0x43   : > { %2074 = vmatprep.subr.bf16.mxu0 %v2715_v4  ;;  %v2802_v4 = vld [vmem:[%s3920_s1 + $0x5d4] ss:$8 sps:$4 sm:$0xff]  }
  0x45   : > { %1903 = vmatpush1.bf16.msra.mxu1 %v2717_v5  ;;  %v2797_v5 = vld [vmem:[%s3920_s1 + $0x1d0] ss:$8 sps:$4 sm:$0xff]  }
  0x46   : > { %2075 = vmatpush1.bf16.msra.mxu0 %v2718_v6  ;;  %1915 = vmatprep.subr.bf16.mxu1 %v2721_v7  ;;  %v2800_v6 = vld [vmem:[%s3920_s1 + $0x5d0] ss:$8 sps:$4 sm:$0xff]   ;;  %v2805_v7 = vld [vmem:[%s3920_s1 + $0x1e4] ss:$8 sps:$4 sm:$0xff]  }
  0x47   : > { %2087 = vmatprep.subr.bf16.mxu0 %v2724_v8  ;;  %v2808_v8 = vld [vmem:[%s3920_s1 + $0x5e4] ss:$8 sps:$4 sm:$0xff]  }
  0x48   : > { %1905 = vmatmul.mubr.bf16.vlgmr.msra.gmra.mrb[0].mxu1 %v2308_v9  ;;  %v2803_v9 = vld [vmem:[%s3920_s1 + $0x1e0] ss:$8 sps:$4 sm:$0xff]  }
  0x49   : > { %2077 = vmatmul.mubr.bf16.vlgmr.msra.gmra.mrb[0].mxu0 %v2316_v11  ;;  %1916 = vmatpush1.bf16.msra.mxu1 %v2719_v10  ;;  %v2806_v10 = vld [vmem:[%s3920_s1 + $0x5e0] ss:$8 sps:$4 sm:$0xff]   ;;  %v2811_v11 = vld [vmem:[%s3920_s1 + $0x1f4] ss:$8 sps:$4 sm:$0xff]  }
  0x4a   : > { %2088 = vmatpush1.bf16.msra.mxu0 %v2722_v12  ;;  %1917 = vmatprep.subr.bf16.mxu1 %v2727_v13  ;;  %v2814_v12 = vld [vmem:[%s3920_s1 + $0x5f4] ss:$8 sps:$4 sm:$0xff]   ;;  %v2809_v13 = vld [vmem:[%s3920_s1 + $0x1f0] ss:$8 sps:$4 sm:$0xff]  }
  0x4b   : > { %2089 = vmatprep.subr.bf16.mxu0 %v2730_v14  ;;  %1947 = vmatprep.mubr.bf16.mxu1 %v2311_v41  ;;  %v2812_v14 = vld [vmem:[%s3920_s1 + $0x5f0] ss:$8 sps:$4 sm:$0xff]   ;;  %v2839_v41 = vld [vmem:[%s3920_s1 + $0x240] ss:$8 sps:$4 sm:$0xff]  }
  0x4c   : > { %2119 = vmatprep.mubr.bf16.mxu0 %v2319_v44  ;;  %v2850_v44 = vld [vmem:[%s3920_s1 + $0x654] ss:$8 sps:$4 sm:$0xff]  }
  0x4d   : > { %1918 = vmatpush1.bf16.msra.mxu1 %v2725_v15  ;;  %v2817_v15 = vld [vmem:[%s3920_s1 + $0x204] ss:$8 sps:$4 sm:$0xff]  }
  0x4e   : > { %2090 = vmatpush1.bf16.msra.mxu0 %v2728_v16  ;;  %1919 = vmatprep.subr.bf16.mxu1 %v2733_v17  ;;  %v2820_v16 = vld [vmem:[%s3920_s1 + $0x604] ss:$8 sps:$4 sm:$0xff]   ;;  %v2310_v17 = vcombine.low %v3345_v37, %v3348_v38  ;;  %v2833_v37 = vld [vmem:[%s3920_s1 + $0x230] ss:$8 sps:$4 sm:$0xff]  }
  0x4f   : > { %2091 = vmatprep.subr.bf16.mxu0 %v2736_v18  ;;  %v2815_v18 = vld [vmem:[%s3920_s1 + $0x200] ss:$8 sps:$4 sm:$0xff]   ;;  %v2836_v38 = vld [vmem:[%s3920_s1 + $0x630] ss:$8 sps:$4 sm:$0xff]  }
  0x51   : > { %1920 = vmatpush1.bf16.msra.mxu1 %v2731_v19  ;;  %v2318_v19 = vcombine.low %v3359_v42, %v3362_v43  ;;  %v2842_v42 = vld [vmem:[%s3920_s1 + $0x640] ss:$8 sps:$4 sm:$0xff]   ;;  %v2847_v43 = vld [vmem:[%s3920_s1 + $0x254] ss:$8 sps:$4 sm:$0xff]  }
  0x52   : > { %2092 = vmatpush1.bf16.msra.mxu0 %v2734_v20  ;;  %1921 = vmatprep.subr.bf16.mxu1 %v2739_v21  ;;  %v2818_v20 = vld [vmem:[%s3920_s1 + $0x600] ss:$8 sps:$4 sm:$0xff]   ;;  %v2823_v21 = vld [vmem:[%s3920_s1 + $0x214] ss:$8 sps:$4 sm:$0xff]  }
  0x53   : > { %2093 = vmatprep.subr.bf16.mxu0 %v2742_v22  ;;  %v2826_v22 = vld [vmem:[%s3920_s1 + $0x614] ss:$8 sps:$4 sm:$0xff]  }
  0x55   : > { %1922 = vmatpush1.bf16.msra.mxu1 %v2737_v23  ;;  %v2821_v23 = vld [vmem:[%s3920_s1 + $0x210] ss:$8 sps:$4 sm:$0xff]  }
  0x56   : > { %2094 = vmatpush1.bf16.msra.mxu0 %v2740_v24  ;;  %1923 = vmatprep.subr.bf16.mxu1 %v2745_v25  ;;  %v2824_v24 = vld [vmem:[%s3920_s1 + $0x610] ss:$8 sps:$4 sm:$0xff]  }
  0x57   : > { %2095 = vmatprep.subr.bf16.mxu0 %v2748_v26  ;;  %v3497_v25 = vld [vmem:[%s3194_s17 + $0x10] sm:$0xff] }
  0x58   : > { %v3500_v26 = vld [vmem:[%s3194_s17 + $0x50] sm:$0xff] }
  0x59   : > { %1924 = vmatpush1.bf16.msra.mxu1 %v2743_v27  ;;  %v2829_v27 = vld [vmem:[%s3920_s1 + $0x224] ss:$8 sps:$4 sm:$0xff]  }
  0x5a   : > { %2096 = vmatpush1.bf16.msra.mxu0 %v2746_v28  ;;  %1925 = vmatprep.subr.bf16.mxu1 %v2751_v29  ;;  %v2832_v28 = vld [vmem:[%s3920_s1 + $0x624] ss:$8 sps:$4 sm:$0xff]   ;;  %v2313_v29 = vcombine.high %v3497_v25, %v3500_v26 }
  0x5b   : > { %2097 = vmatprep.subr.bf16.mxu0 %v2754_v30  ;;  %v3511_v30 = vld [vmem:[%s3194_s17 + $0x30] sm:$0xff] }
  0x5d   : > { %1926 = vmatpush1.bf16.msra.mxu1 %v2749_v31  ;;  %v3514_v31 = vld [vmem:[%s3194_s17 + $0x70] sm:$0xff] }
  0x5e   : > { %2098 = vmatpush1.bf16.msra.mxu0 %v2752_v32  ;;  %1927 = vmatprep.subr.bf16.mxu1 %v2757_v33  ;;  %v2321_v32 = vcombine.high %v3511_v30, %v3514_v31  ;;  %v2827_v33 = vld [vmem:[%s3920_s1 + $0x220] ss:$8 sps:$4 sm:$0xff]  }
  0x5f   : > { %2099 = vmatprep.subr.bf16.mxu0 %v2760_v34  ;;  %v2830_v34 = vld [vmem:[%s3920_s1 + $0x620] ss:$8 sps:$4 sm:$0xff]  }
  0x61   : > { %1928 = vmatpush1.bf16.msra.mxu1 %v2755_v35  ;;  %v2835_v35 = vld [vmem:[%s3920_s1 + $0x234] ss:$8 sps:$4 sm:$0xff]  }
  0x62   : > { %2100 = vmatpush1.bf16.msra.mxu0 %v2758_v36  ;;  %1929 = vmatprep.subr.bf16.mxu1 %v2763_v39  ;;  %v2838_v36 = vld [vmem:[%s3920_s1 + $0x634] ss:$8 sps:$4 sm:$0xff]   ;;  %v2841_v39 = vld [vmem:[%s3920_s1 + $0x244] ss:$8 sps:$4 sm:$0xff]  }
  0x63   : > { %2101 = vmatprep.subr.bf16.mxu0 %v2766_v40  ;;  %v2844_v40 = vld [vmem:[%s3920_s1 + $0x644] ss:$8 sps:$4 sm:$0xff]  }
  0x65   : > { %1930 = vmatpush1.bf16.msra.mxu1 %v2761_v45  ;;  %v2845_v45 = vld [vmem:[%s3920_s1 + $0x250] ss:$8 sps:$4 sm:$0xff]  }
  0x66   : > { %2102 = vmatpush1.bf16.msra.mxu0 %v2764_v46  ;;  %1931 = vmatprep.subr.bf16.mxu1 %v2769_v47  ;;  %v2848_v46 = vld [vmem:[%s3920_s1 + $0x650] ss:$8 sps:$4 sm:$0xff]   ;;  %v2853_v47 = vld [vmem:[%s3920_s1 + $0x264] ss:$8 sps:$4 sm:$0xff]  }
  0x67   : > { %2103 = vmatprep.subr.bf16.mxu0 %v2772_v48  ;;  %v2856_v48 = vld [vmem:[%s3920_s1 + $0x664] ss:$8 sps:$4 sm:$0xff]  }
  0x69   : > { %1932 = vmatpush1.bf16.msra.mxu1 %v2767_v49  ;;  %v2851_v49 = vld [vmem:[%s3920_s1 + $0x260] ss:$8 sps:$4 sm:$0xff]  }
  0x6a   : > { %2104 = vmatpush1.bf16.msra.mxu0 %v2770_v50  ;;  %1933 = vmatprep.subr.bf16.mxu1 %v2775_v51  ;;  %v2854_v50 = vld [vmem:[%s3920_s1 + $0x660] ss:$8 sps:$4 sm:$0xff]   ;;  %v2859_v51 = vld [vmem:[%s3920_s1 + $0x274] ss:$8 sps:$4 sm:$0xff]  }
  0x6b   : > { %2105 = vmatprep.subr.bf16.mxu0 %v2778_v52  ;;  %v2862_v52 = vld [vmem:[%s3920_s1 + $0x674] ss:$8 sps:$4 sm:$0xff]  }
  0x6d   : > { %1934 = vmatpush1.bf16.msra.mxu1 %v2773_v53  ;;  %v2857_v53 = vld [vmem:[%s3920_s1 + $0x270] ss:$8 sps:$4 sm:$0xff]  }
  0x6e   : > { %2106 = vmatpush1.bf16.msra.mxu0 %v2776_v54  ;;  %1935 = vmatprep.subr.bf16.mxu1 %v2781_v55  ;;  %v2860_v54 = vld [vmem:[%s3920_s1 + $0x670] ss:$8 sps:$4 sm:$0xff]   ;;  %v2865_v55 = vld [vmem:[%s3920_s1 + $0x284] ss:$8 sps:$4 sm:$0xff]  }
  0x6f   : > { %2107 = vmatprep.subr.bf16.mxu0 %v2784_v56  ;;  %v2868_v56 = vld [vmem:[%s3920_s1 + $0x684] ss:$8 sps:$4 sm:$0xff]  }
  0x71   : > { %1936 = vmatpush1.bf16.msra.mxu1 %v2779_v57  ;;  %v2863_v57 = vld [vmem:[%s3920_s1 + $0x280] ss:$8 sps:$4 sm:$0xff]  }
  0x72   : > { %2108 = vmatpush1.bf16.msra.mxu0 %v2782_v58  ;;  %1937 = vmatprep.subr.bf16.mxu1 %v2787_v59  ;;  %v2866_v58 = vld [vmem:[%s3920_s1 + $0x680] ss:$8 sps:$4 sm:$0xff]   ;;  %v2871_v59 = vld [vmem:[%s3920_s1 + $0x294] ss:$8 sps:$4 sm:$0xff]  }
  0x73   : > { %2109 = vmatprep.subr.bf16.mxu0 %v2790_v60  ;;  %v2874_v60 = vld [vmem:[%s3920_s1 + $0x694] ss:$8 sps:$4 sm:$0xff]  }
  0x75   : > { %1938 = vmatpush1.bf16.msra.mxu1 %v2785_v61  ;;  %v2869_v61 = vld [vmem:[%s3920_s1 + $0x290] ss:$8 sps:$4 sm:$0xff]  }
  0x76   : > { %2110 = vmatpush1.bf16.msra.mxu0 %v2788_v62  ;;  %1939 = vmatprep.subr.bf16.mxu1 %v2793_v63  ;;  %v2872_v62 = vld [vmem:[%s3920_s1 + $0x690] ss:$8 sps:$4 sm:$0xff]   ;;  %v2877_v63 = vld [vmem:[%s3920_s1 + $0x2a4] ss:$8 sps:$4 sm:$0xff]  }
  0x77   : > { %2111 = vmatprep.subr.bf16.mxu0 %v2796_v0  ;;  %v2880_v0 = vld [vmem:[%s3920_s1 + $0x6a4] ss:$8 sps:$4 sm:$0xff]  }
  0x79   : > { %1940 = vmatpush1.bf16.msra.mxu1 %v2791_v1  ;;  %v2875_v1 = vld [vmem:[%s3920_s1 + $0x2a0] ss:$8 sps:$4 sm:$0xff]  }
  0x7a   : > { %2112 = vmatpush1.bf16.msra.mxu0 %v2794_v2  ;;  %1941 = vmatprep.subr.bf16.mxu1 %v2799_v3  ;;  %v2878_v2 = vld [vmem:[%s3920_s1 + $0x6a0] ss:$8 sps:$4 sm:$0xff]   ;;  %v2883_v3 = vld [vmem:[%s3920_s1 + $0x2b4] ss:$8 sps:$4 sm:$0xff]  }
  0x7b   : > { %2113 = vmatprep.subr.bf16.mxu0 %v2802_v4  ;;  %v2886_v4 = vld [vmem:[%s3920_s1 + $0x6b4] ss:$8 sps:$4 sm:$0xff]  }
  0x7d   : > { %1942 = vmatpush1.bf16.msra.mxu1 %v2797_v5  ;;  %v2881_v5 = vld [vmem:[%s3920_s1 + $0x2b0] ss:$8 sps:$4 sm:$0xff]  }
  0x7e   : > { %2114 = vmatpush1.bf16.msra.mxu0 %v2800_v6  ;;  %1943 = vmatprep.subr.bf16.mxu1 %v2805_v7  ;;  %v2884_v6 = vld [vmem:[%s3920_s1 + $0x6b0] ss:$8 sps:$4 sm:$0xff]   ;;  %v2889_v7 = vld [vmem:[%s3920_s1 + $0x2c4] ss:$8 sps:$4 sm:$0xff]  }
  0x7f   : > { %2115 = vmatprep.subr.bf16.mxu0 %v2808_v8  ;;  %v2892_v8 = vld [vmem:[%s3920_s1 + $0x6c4] ss:$8 sps:$4 sm:$0xff]  }
  0x81   : > { %1944 = vmatpush1.bf16.msra.mxu1 %v2803_v9  ;;  %v2887_v9 = vld [vmem:[%s3920_s1 + $0x2c0] ss:$8 sps:$4 sm:$0xff]  }
  0x82   : > { %2116 = vmatpush1.bf16.msra.mxu0 %v2806_v10  ;;  %1945 = vmatprep.subr.bf16.mxu1 %v2811_v11  ;;  %v2890_v10 = vld [vmem:[%s3920_s1 + $0x6c0] ss:$8 sps:$4 sm:$0xff]   ;;  %v2895_v11 = vld [vmem:[%s3920_s1 + $0x2d4] ss:$8 sps:$4 sm:$0xff]  }
  0x83   : > { %2117 = vmatprep.subr.bf16.mxu0 %v2814_v12  ;;  %v2898_v12 = vld [vmem:[%s3920_s1 + $0x6d4] ss:$8 sps:$4 sm:$0xff]  }
  0x85   : > { %1946 = vmatpush1.bf16.msra.mxu1 %v2809_v13  ;;  %v2893_v13 = vld [vmem:[%s3920_s1 + $0x2d0] ss:$8 sps:$4 sm:$0xff]  }
  0x86   : > { %2118 = vmatpush1.bf16.msra.mxu0 %v2812_v14  ;;  %1958 = vmatprep.subr.bf16.mxu1 %v2817_v15  ;;  %v2896_v14 = vld [vmem:[%s3920_s1 + $0x6d0] ss:$8 sps:$4 sm:$0xff]   ;;  %v2901_v15 = vld [vmem:[%s3920_s1 + $0x2e4] ss:$8 sps:$4 sm:$0xff]  }
  0x87   : > { %2130 = vmatprep.subr.bf16.mxu0 %v2820_v16  ;;  %v2904_v16 = vld [vmem:[%s3920_s1 + $0x6e4] ss:$8 sps:$4 sm:$0xff]  }
  0x88   : > { %1948 = vmatmul.mubr.bf16.vlgmr.msra.gmra.mrb[0].mxu1 %v2310_v17  ;;  %v2899_v17 = vld [vmem:[%s3920_s1 + $0x2e0] ss:$8 sps:$4 sm:$0xff]  }
  0x89   : > { %2120 = vmatmul.mubr.bf16.vlgmr.msra.gmra.mrb[0].mxu0 %v2318_v19  ;;  %1959 = vmatpush1.bf16.msra.mxu1 %v2815_v18  ;;  %v2902_v18 = vld [vmem:[%s3920_s1 + $0x6e0] ss:$8 sps:$4 sm:$0xff]   ;;  %v2907_v19 = vld [vmem:[%s3920_s1 + $0x2f4] ss:$8 sps:$4 sm:$0xff]  }
  0x8a   : > { %2131 = vmatpush1.bf16.msra.mxu0 %v2818_v20  ;;  %1960 = vmatprep.subr.bf16.mxu1 %v2823_v21  ;;  %v2910_v20 = vld [vmem:[%s3920_s1 + $0x6f4] ss:$8 sps:$4 sm:$0xff]   ;;  %v2905_v21 = vld [vmem:[%s3920_s1 + $0x2f0] ss:$8 sps:$4 sm:$0xff]  }
  0x8b   : > { %2132 = vmatprep.subr.bf16.mxu0 %v2826_v22  ;;  %1990 = vmatprep.mubr.bf16.mxu1 %v2313_v29  ;;  %v2908_v22 = vld [vmem:[%s3920_s1 + $0x6f0] ss:$8 sps:$4 sm:$0xff]   ;;  %v2320_v29 = vcombine.low %v3511_v30, %v3514_v31 }
  0x8c   : > { %2162 = vmatprep.mubr.bf16.mxu0 %v2321_v32  ;;  %v3694_v32 = vld [vmem:[%s3194_s17 + $0x58] sm:$0xff] }
  0x8d   : > { %1961 = vmatpush1.bf16.msra.mxu1 %v2821_v23  ;;  %v2913_v23 = vld [vmem:[%s3920_s1 + $0x304] ss:$8 sps:$4 sm:$0xff]  }
  0x8e   : > { %2133 = vmatpush1.bf16.msra.mxu0 %v2824_v24  ;;  %1962 = vmatprep.subr.bf16.mxu1 %v2829_v27  ;;  %v2916_v24 = vld [vmem:[%s3920_s1 + $0x704] ss:$8 sps:$4 sm:$0xff]   ;;  %v3687_v27 = vld [vmem:[%s3194_s17 + $0x18] sm:$0xff] }
  0x8f   : > { %2134 = vmatprep.subr.bf16.mxu0 %v2832_v28  ;;  %v2312_v28 = vcombine.low %v3497_v25, %v3500_v26  ;;  %v2919_v25 = vld [vmem:[%s3920_s1 + $0x314] ss:$8 sps:$4 sm:$0xff]   ;;  %v2315_v30 = vcombine.high %v3687_v27, %v3694_v32 }
  0x90   : > { %v2922_v26 = vld [vmem:[%s3920_s1 + $0x714] ss:$8 sps:$4 sm:$0xff]  }
  0x91   : > { %1963 = vmatpush1.bf16.msra.mxu1 %v2827_v33  ;;  %v3697_v33 = vld [vmem:[%s3194_s17 + $0x38] sm:$0xff] }
  0x92   : > { %2135 = vmatpush1.bf16.msra.mxu0 %v2830_v34  ;;  %1964 = vmatprep.subr.bf16.mxu1 %v2835_v35  ;;  %v3700_v34 = vld [vmem:[%s3194_s17 + $0x78] sm:$0xff]  ;;  %v2911_v35 = vld [vmem:[%s3920_s1 + $0x300] ss:$8 sps:$4 sm:$0xff]  }
  0x93   : > { %2136 = vmatprep.subr.bf16.mxu0 %v2838_v36  ;;  %v2914_v36 = vld [vmem:[%s3920_s1 + $0x700] ss:$8 sps:$4 sm:$0xff]   ;;  %v2323_v31 = vcombine.high %v3697_v33, %v3700_v34 }
  0x95   : > { %1965 = vmatpush1.bf16.msra.mxu1 %v2833_v37  ;;  %v2917_v37 = vld [vmem:[%s3920_s1 + $0x310] ss:$8 sps:$4 sm:$0xff]  }
  0x96   : > { %2137 = vmatpush1.bf16.msra.mxu0 %v2836_v38  ;;  %1966 = vmatprep.subr.bf16.mxu1 %v2841_v39  ;;  %v2920_v38 = vld [vmem:[%s3920_s1 + $0x710] ss:$8 sps:$4 sm:$0xff]   ;;  %v2925_v39 = vld [vmem:[%s3920_s1 + $0x324] ss:$8 sps:$4 sm:$0xff]  }
  0x97   : > { %2138 = vmatprep.subr.bf16.mxu0 %v2844_v40  ;;  %v2928_v40 = vld [vmem:[%s3920_s1 + $0x724] ss:$8 sps:$4 sm:$0xff]  }
  0x99   : > { %1967 = vmatpush1.bf16.msra.mxu1 %v2839_v41  ;;  %v2923_v41 = vld [vmem:[%s3920_s1 + $0x320] ss:$8 sps:$4 sm:$0xff]  }
  0x9a   : > { %2139 = vmatpush1.bf16.msra.mxu0 %v2842_v42  ;;  %1968 = vmatprep.subr.bf16.mxu1 %v2847_v43  ;;  %v2926_v42 = vld [vmem:[%s3920_s1 + $0x720] ss:$8 sps:$4 sm:$0xff]   ;;  %v2931_v43 = vld [vmem:[%s3920_s1 + $0x334] ss:$8 sps:$4 sm:$0xff]  }
  0x9b   : > { %2140 = vmatprep.subr.bf16.mxu0 %v2850_v44  ;;  %v2934_v44 = vld [vmem:[%s3920_s1 + $0x734] ss:$8 sps:$4 sm:$0xff]  }
  0x9d   : > { %1969 = vmatpush1.bf16.msra.mxu1 %v2845_v45  ;;  %v2929_v45 = vld [vmem:[%s3920_s1 + $0x330] ss:$8 sps:$4 sm:$0xff]  }
  0x9e   : > { %2141 = vmatpush1.bf16.msra.mxu0 %v2848_v46  ;;  %1970 = vmatprep.subr.bf16.mxu1 %v2853_v47  ;;  %v2932_v46 = vld [vmem:[%s3920_s1 + $0x730] ss:$8 sps:$4 sm:$0xff]   ;;  %v2937_v47 = vld [vmem:[%s3920_s1 + $0x344] ss:$8 sps:$4 sm:$0xff]  }
  0x9f   : > { %2142 = vmatprep.subr.bf16.mxu0 %v2856_v48  ;;  %v2940_v48 = vld [vmem:[%s3920_s1 + $0x744] ss:$8 sps:$4 sm:$0xff]  }
  0xa1   : > { %1971 = vmatpush1.bf16.msra.mxu1 %v2851_v49  ;;  %v2935_v49 = vld [vmem:[%s3920_s1 + $0x340] ss:$8 sps:$4 sm:$0xff]  }
  0xa2   : > { %2143 = vmatpush1.bf16.msra.mxu0 %v2854_v50  ;;  %1972 = vmatprep.subr.bf16.mxu1 %v2859_v51  ;;  %v2938_v50 = vld [vmem:[%s3920_s1 + $0x740] ss:$8 sps:$4 sm:$0xff]   ;;  %v2943_v51 = vld [vmem:[%s3920_s1 + $0x354] ss:$8 sps:$4 sm:$0xff]  }
  0xa3   : > { %2144 = vmatprep.subr.bf16.mxu0 %v2862_v52  ;;  %v2946_v52 = vld [vmem:[%s3920_s1 + $0x754] ss:$8 sps:$4 sm:$0xff]  }
  0xa5   : > { %1973 = vmatpush1.bf16.msra.mxu1 %v2857_v53  ;;  %v2941_v53 = vld [vmem:[%s3920_s1 + $0x350] ss:$8 sps:$4 sm:$0xff]  }
  0xa6   : > { %2145 = vmatpush1.bf16.msra.mxu0 %v2860_v54  ;;  %1974 = vmatprep.subr.bf16.mxu1 %v2865_v55  ;;  %v2944_v54 = vld [vmem:[%s3920_s1 + $0x750] ss:$8 sps:$4 sm:$0xff]   ;;  %v2949_v55 = vld [vmem:[%s3920_s1 + $0x364] ss:$8 sps:$4 sm:$0xff]  }
  0xa7   : > { %2146 = vmatprep.subr.bf16.mxu0 %v2868_v56  ;;  %v2952_v56 = vld [vmem:[%s3920_s1 + $0x764] ss:$8 sps:$4 sm:$0xff]  }
  0xa9   : > { %1975 = vmatpush1.bf16.msra.mxu1 %v2863_v57  ;;  %v2947_v57 = vld [vmem:[%s3920_s1 + $0x360] ss:$8 sps:$4 sm:$0xff]  }
  0xaa   : > { %2147 = vmatpush1.bf16.msra.mxu0 %v2866_v58  ;;  %1976 = vmatprep.subr.bf16.mxu1 %v2871_v59  ;;  %v2950_v58 = vld [vmem:[%s3920_s1 + $0x760] ss:$8 sps:$4 sm:$0xff]   ;;  %v2955_v59 = vld [vmem:[%s3920_s1 + $0x374] ss:$8 sps:$4 sm:$0xff]  }
  0xab   : > { %2148 = vmatprep.subr.bf16.mxu0 %v2874_v60  ;;  %v2958_v60 = vld [vmem:[%s3920_s1 + $0x774] ss:$8 sps:$4 sm:$0xff]  }
  0xad   : > { %1977 = vmatpush1.bf16.msra.mxu1 %v2869_v61  ;;  %v2953_v61 = vld [vmem:[%s3920_s1 + $0x370] ss:$8 sps:$4 sm:$0xff]  }
  0xae   : > { %2149 = vmatpush1.bf16.msra.mxu0 %v2872_v62  ;;  %1978 = vmatprep.subr.bf16.mxu1 %v2877_v63  ;;  %v2956_v62 = vld [vmem:[%s3920_s1 + $0x770] ss:$8 sps:$4 sm:$0xff]   ;;  %v2961_v63 = vld [vmem:[%s3920_s1 + $0x384] ss:$8 sps:$4 sm:$0xff]  }
  0xaf   : > { %2150 = vmatprep.subr.bf16.mxu0 %v2880_v0  ;;  %v2964_v0 = vld [vmem:[%s3920_s1 + $0x784] ss:$8 sps:$4 sm:$0xff]  }
  0xb1   : > { %1979 = vmatpush1.bf16.msra.mxu1 %v2875_v1  ;;  %v2959_v1 = vld [vmem:[%s3920_s1 + $0x380] ss:$8 sps:$4 sm:$0xff]  }
  0xb2   : > { %2151 = vmatpush1.bf16.msra.mxu0 %v2878_v2  ;;  %1980 = vmatprep.subr.bf16.mxu1 %v2883_v3  ;;  %v2962_v2 = vld [vmem:[%s3920_s1 + $0x780] ss:$8 sps:$4 sm:$0xff]   ;;  %v2967_v3 = vld [vmem:[%s3920_s1 + $0x394] ss:$8 sps:$4 sm:$0xff]  }
  0xb3   : > { %2152 = vmatprep.subr.bf16.mxu0 %v2886_v4  ;;  %v2970_v4 = vld [vmem:[%s3920_s1 + $0x794] ss:$8 sps:$4 sm:$0xff]  }
  0xb5   : > { %1981 = vmatpush1.bf16.msra.mxu1 %v2881_v5  ;;  %v2965_v5 = vld [vmem:[%s3920_s1 + $0x390] ss:$8 sps:$4 sm:$0xff]  }
  0xb6   : > { %2153 = vmatpush1.bf16.msra.mxu0 %v2884_v6  ;;  %1982 = vmatprep.subr.bf16.mxu1 %v2889_v7  ;;  %v2968_v6 = vld [vmem:[%s3920_s1 + $0x790] ss:$8 sps:$4 sm:$0xff]   ;;  %v2973_v7 = vld [vmem:[%s3920_s1 + $0x3a4] ss:$8 sps:$4 sm:$0xff]  }
  0xb7   : > { %2154 = vmatprep.subr.bf16.mxu0 %v2892_v8  ;;  %v2976_v8 = vld [vmem:[%s3920_s1 + $0x7a4] ss:$8 sps:$4 sm:$0xff]  }
  0xb9   : > { %1983 = vmatpush1.bf16.msra.mxu1 %v2887_v9  ;;  %v2971_v9 = vld [vmem:[%s3920_s1 + $0x3a0] ss:$8 sps:$4 sm:$0xff]  }
  0xba   : > { %2155 = vmatpush1.bf16.msra.mxu0 %v2890_v10  ;;  %1984 = vmatprep.subr.bf16.mxu1 %v2895_v11  ;;  %v2974_v10 = vld [vmem:[%s3920_s1 + $0x7a0] ss:$8 sps:$4 sm:$0xff]   ;;  %v2979_v11 = vld [vmem:[%s3920_s1 + $0x3b4] ss:$8 sps:$4 sm:$0xff]  }
  0xbb   : > { %2156 = vmatprep.subr.bf16.mxu0 %v2898_v12  ;;  %v2982_v12 = vld [vmem:[%s3920_s1 + $0x7b4] ss:$8 sps:$4 sm:$0xff]  }
  0xbd   : > { %1985 = vmatpush1.bf16.msra.mxu1 %v2893_v13  ;;  %v2977_v13 = vld [vmem:[%s3920_s1 + $0x3b0] ss:$8 sps:$4 sm:$0xff]  }
  0xbe   : > { %2157 = vmatpush1.bf16.msra.mxu0 %v2896_v14  ;;  %1986 = vmatprep.subr.bf16.mxu1 %v2901_v15  ;;  %v2980_v14 = vld [vmem:[%s3920_s1 + $0x7b0] ss:$8 sps:$4 sm:$0xff]   ;;  %v2985_v15 = vld [vmem:[%s3920_s1 + $0x3c4] ss:$8 sps:$4 sm:$0xff]  }
  0xbf   : > { %2158 = vmatprep.subr.bf16.mxu0 %v2904_v16  ;;  %v2988_v16 = vld [vmem:[%s3920_s1 + $0x7c4] ss:$8 sps:$4 sm:$0xff]  }
  0xc1   : > { %1987 = vmatpush1.bf16.msra.mxu1 %v2899_v17  ;;  %v2983_v17 = vld [vmem:[%s3920_s1 + $0x3c0] ss:$8 sps:$4 sm:$0xff]  }
  0xc2   : > { %2159 = vmatpush1.bf16.msra.mxu0 %v2902_v18  ;;  %1988 = vmatprep.subr.bf16.mxu1 %v2907_v19  ;;  %v2986_v18 = vld [vmem:[%s3920_s1 + $0x7c0] ss:$8 sps:$4 sm:$0xff]   ;;  %v2991_v19 = vld [vmem:[%s3920_s1 + $0x3d4] ss:$8 sps:$4 sm:$0xff]  }
  0xc3   : > { %2160 = vmatprep.subr.bf16.mxu0 %v2910_v20  ;;  %v2994_v20 = vld [vmem:[%s3920_s1 + $0x7d4] ss:$8 sps:$4 sm:$0xff]  }
  0xc5   : > { %1989 = vmatpush1.bf16.msra.mxu1 %v2905_v21  ;;  %v2989_v21 = vld [vmem:[%s3920_s1 + $0x3d0] ss:$8 sps:$4 sm:$0xff]  }
  0xc6   : > { %2161 = vmatpush1.bf16.msra.mxu0 %v2908_v22  ;;  %2001 = vmatprep.subr.bf16.mxu1 %v2913_v23  ;;  %v2992_v22 = vld [vmem:[%s3920_s1 + $0x7d0] ss:$8 sps:$4 sm:$0xff]   ;;  %v2997_v23 = vld [vmem:[%s3920_s1 + $0x3e4] ss:$8 sps:$4 sm:$0xff]  }
  0xc7   : > { %2173 = vmatprep.subr.bf16.mxu0 %v2916_v24  ;;  %v3000_v24 = vld [vmem:[%s3920_s1 + $0x7e4] ss:$8 sps:$4 sm:$0xff]  }
  0xc8   : > { %1991 = vmatmul.mubr.bf16.vlgmr.msra.gmra.mrb[0].mxu1 %v2312_v28  ;;  %v2995_v28 = vld [vmem:[%s3920_s1 + $0x3e0] ss:$8 sps:$4 sm:$0xff]  }
  0xc9   : > { %2163 = vmatmul.mubr.bf16.vlgmr.msra.gmra.mrb[0].mxu0 %v2320_v29  ;;  %2002 = vmatpush1.bf16.msra.mxu1 %v2911_v35  ;;  %v2998_v29 = vld [vmem:[%s3920_s1 + $0x7e0] ss:$8 sps:$4 sm:$0xff]   ;;  %v3003_v35 = vld [vmem:[%s3920_s1 + $0x3f4] ss:$8 sps:$4 sm:$0xff]  }
  0xca   : > { %2174 = vmatpush1.bf16.msra.mxu0 %v2914_v36  ;;  %2003 = vmatprep.subr.bf16.mxu1 %v2919_v25  ;;  %v3006_v36 = vld [vmem:[%s3920_s1 + $0x7f4] ss:$8 sps:$4 sm:$0xff]   ;;  %v3001_v25 = vld [vmem:[%s3920_s1 + $0x3f0] ss:$8 sps:$4 sm:$0xff]  }
  0xcb   : > { %2175 = vmatprep.subr.bf16.mxu0 %v2922_v26  ;;  %2033 = vmatprep.mubr.bf16.mxu1 %v2315_v30  ;;  %v3004_v26 = vld [vmem:[%s3920_s1 + $0x7f0] ss:$8 sps:$4 sm:$0xff]   ;;  %v2314_v30 = vcombine.low %v3687_v27, %v3694_v32 }
  0xcc   : > { %2205 = vmatprep.mubr.bf16.mxu0 %v2323_v31  ;;  %v2322_v31 = vcombine.low %v3697_v33, %v3700_v34 }
  0xcd   : > { %2004 = vmatpush1.bf16.msra.mxu1 %v2917_v37  ;;  %v502_v37 = vlaneseq }
  0xce   : > { %2176 = vmatpush1.bf16.msra.mxu0 %v2920_v38  ;;  %2005 = vmatprep.subr.bf16.mxu1 %v2925_v39 }
  0xcf   : > { %2177 = vmatprep.subr.bf16.mxu0 %v2928_v40  ;;  %v503_v38 = vshrl.u32 %v502_v37, 7  ;;  %v500_v40 = vld [vmem:[%s3921_s2] sm:$0x3] }
  0xd1   : > { %2006 = vmatpush1.bf16.msra.mxu1 %v2923_v41  ;;  %v504_v39 = vsub.s32 0, %v503_v38  ;;  %v508_v41 = vsub.s32 1, %v503_v38 }
  0xd2   : > { %2178 = vmatpush1.bf16.msra.mxu0 %v2926_v42  ;;  %2007 = vmatprep.subr.bf16.mxu1 %v2931_v43 }
  0xd3   : > { %2179 = vmatprep.subr.bf16.mxu0 %v2934_v44  ;;  %v505_v42 = vrot.slane %v500_v40, %v504_v39  ;;  %v509_v43 = vrot.slane %v500_v40, %v508_v41 }
  0xd5   : > { %2008 = vmatpush1.bf16.msra.mxu1 %v2929_v45 }
  0xd6   : > { %2180 = vmatpush1.bf16.msra.mxu0 %v2932_v46  ;;  %2009 = vmatprep.subr.bf16.mxu1 %v2937_v47 }
  0xd7   : > { %2181 = vmatprep.subr.bf16.mxu0 %v2940_v48 }
  0xd9   : > { %2010 = vmatpush1.bf16.msra.mxu1 %v2935_v49 }
  0xda   : > { %2182 = vmatpush1.bf16.msra.mxu0 %v2938_v50  ;;  %2011 = vmatprep.subr.bf16.mxu1 %v2943_v51 }
  0xdb   : > { %2183 = vmatprep.subr.bf16.mxu0 %v2946_v52 }
  0xdd   : > { %2012 = vmatpush1.bf16.msra.mxu1 %v2941_v53 }
  0xde   : > { %2184 = vmatpush1.bf16.msra.mxu0 %v2944_v54  ;;  %2013 = vmatprep.subr.bf16.mxu1 %v2949_v55 }
  0xdf   : > { %2185 = vmatprep.subr.bf16.mxu0 %v2952_v56  ;;  %v2228_v56 = vld [vmem:[%s3922_s3] sm:$0xff] }
  0xe1   : > { %2014 = vmatpush1.bf16.msra.mxu1 %v2947_v57 }
  0xe2   : > { %2186 = vmatpush1.bf16.msra.mxu0 %v2950_v58  ;;  %2015 = vmatprep.subr.bf16.mxu1 %v2955_v59  ;;  %v2229_v59 = vld [vmem:[%s3922_s3 + $0x8] sm:$0xff] }
  0xe3   : > { %2187 = vmatprep.subr.bf16.mxu0 %v2958_v60 }
  0xe5   : > { %2016 = vmatpush1.bf16.msra.mxu1 %v2953_v61 }
  0xe6   : > { %2188 = vmatpush1.bf16.msra.mxu0 %v2956_v62  ;;  %2017 = vmatprep.subr.bf16.mxu1 %v2961_v63  ;;  %v2230_v62 = vld [vmem:[%s3922_s3 + $0x10] sm:$0xff] }
  0xe7   : > { %2189 = vmatprep.subr.bf16.mxu0 %v2964_v0 }
  0xe9   : > { %2018 = vmatpush1.bf16.msra.mxu1 %v2959_v1 }
  0xea   : > { %2190 = vmatpush1.bf16.msra.mxu0 %v2962_v2  ;;  %2019 = vmatprep.subr.bf16.mxu1 %v2967_v3  ;;  %v2231_v2 = vld [vmem:[%s3922_s3 + $0x18] sm:$0xff] }
  0xeb   : > { %2191 = vmatprep.subr.bf16.mxu0 %v2970_v4 }
  0xed   : > { %2020 = vmatpush1.bf16.msra.mxu1 %v2965_v5 }
  0xee   : > { %2192 = vmatpush1.bf16.msra.mxu0 %v2968_v6  ;;  %2021 = vmatprep.subr.bf16.mxu1 %v2973_v7 }
  0xef   : > { %2193 = vmatprep.subr.bf16.mxu0 %v2976_v8 }
  0xf1   : > { %2022 = vmatpush1.bf16.msra.mxu1 %v2971_v9 }
  0xf2   : > { %2194 = vmatpush1.bf16.msra.mxu0 %v2974_v10  ;;  %2023 = vmatprep.subr.bf16.mxu1 %v2979_v11 }
  0xf3   : > { %2195 = vmatprep.subr.bf16.mxu0 %v2982_v12 }
  0xf5   : > { %2024 = vmatpush1.bf16.msra.mxu1 %v2977_v13 }
  0xf6   : > { %2196 = vmatpush1.bf16.msra.mxu0 %v2980_v14  ;;  %2025 = vmatprep.subr.bf16.mxu1 %v2985_v15 }
  0xf7   : > { %2197 = vmatprep.subr.bf16.mxu0 %v2988_v16 }
  0xf9   : > { %2026 = vmatpush1.bf16.msra.mxu1 %v2983_v17 }
  0xfa   : > { %2198 = vmatpush1.bf16.msra.mxu0 %v2986_v18  ;;  %2027 = vmatprep.subr.bf16.mxu1 %v2991_v19  ;;  %v2249_v18 = vld [vmem:[#allocation2] sm:$0x1] }
  0xfb   : > { %2199 = vmatprep.subr.bf16.mxu0 %v2994_v20 }
  0xfd   : > { %2028 = vmatpush1.bf16.msra.mxu1 %v2989_v21 }
  0xfe   : > { %2200 = vmatpush1.bf16.msra.mxu0 %v2992_v22  ;;  %2029 = vmatprep.subr.bf16.mxu1 %v2997_v23 }
  0xff   : > { %2201 = vmatprep.subr.bf16.mxu0 %v3000_v24 }
 0x101   : > { %2030 = vmatpush1.bf16.msra.mxu1 %v2995_v28 }
 0x102   : > { %2202 = vmatpush1.bf16.msra.mxu0 %v2998_v29  ;;  %2031 = vmatprep.subr.bf16.mxu1 %v3003_v35 }
 0x103   : > { %2203 = vmatprep.subr.bf16.mxu0 %v3006_v36 }
 0x105   : > { %2032 = vmatpush1.bf16.msra.mxu1 %v3001_v25 }
 0x106   : > { %2204 = vmatpush1.bf16.msra.mxu0 %v3004_v26 }
 0x108   : > { %2034 = vmatmul.mubr.bf16.vlgmr.msra.gmra.mrb[0].mxu1 %v2314_v30 }
 0x109   : > { %2206 = vmatmul.mubr.bf16.vlgmr.msra.gmra.mrb[0].mxu0 %v2322_v31 }
 0x1db   : > { %v2035_v44 = vpop.f32.mrb[0].mxu1 }
 0x1dc   : > { %v2207_v45 = vpop.f32.mrb[0].mxu0  ;;  %v2583_v27 = vadd.f32 %v2035_v44, %v505_v42  ;;  %v2037_v32 = vpop.f32.mrb[1].mxu1 }
 0x1dd   : > { %v2209_v46 = vpop.f32.mrb[1].mxu0  ;;  %v2585_v33 = vadd.f32 %v2037_v32, %v509_v43  ;;  %v2039_v34 = vpop.f32.mrb[2].mxu1 }
 0x1de   : > { %v2211_v47 = vpop.f32.mrb[2].mxu0  ;;  %v2584_v48 = vadd.f32 %v2583_v27, %v2207_v45  ;;  %v2587_v49 = vadd.f32 %v2039_v34, %v505_v42  ;;  %v2041_v50 = vpop.f32.mrb[3].mxu1 }
 0x1df   : > { %v2213_v51 = vpop.f32.mrb[3].mxu0  ;;  %v2586_v52 = vadd.f32 %v2585_v33, %v2209_v46  ;;  %v2589_v53 = vadd.f32 %v2041_v50, %v509_v43 }
 0x1e0   : > { %vm2216_vm0 = vcmp.ge.f32.partialorder %v2584_v48, 0.0  ;;  %v2220_v54 = vmul.f32 0.01, %v2584_v48  ;;  %v2588_v55 = vadd.f32 %v2587_v49, %v2211_v47 }
 0x1e1   : > { %vm2217_vm1 = vcmp.ge.f32.partialorder %v2586_v52, 0.0  ;;  %v2221_v57 = vmul.f32 0.01, %v2586_v52  ;;  %v2590_v58 = vadd.f32 %v2589_v53, %v2213_v51 }
 0x1e2   : > { %vm2218_vm2 = vcmp.ge.f32.partialorder %v2588_v55, 0.0  ;;  %v2222_v60 = vmul.f32 0.01, %v2588_v55  ;;  %v2224_v61 = vsel %vm2216_vm0, %v2584_v48, %v2220_v54 }
 0x1e3   : > { %vm2219_vm3 = vcmp.ge.f32.partialorder %v2590_v58, 0.0  ;;  %v2223_v63 = vmul.f32 0.01, %v2590_v58  ;;  %v2225_v0 = vsel %vm2217_vm1, %v2586_v52, %v2221_v57  ;;  %v2232_v1 = vmul.f32 %v2228_v56, %v2224_v61 }
 0x1e4   : > { %v2233_v3 = vmul.f32 %v2229_v59, %v2225_v0  ;;  %v2226_v4 = vsel %vm2218_vm2, %v2588_v55, %v2222_v60 }
 0x1e5   : > { %v2227_v5 = vsel %vm2219_vm3, %v2590_v58, %v2223_v63  ;;  %v2234_v6 = vmul.f32 %v2230_v62, %v2226_v4 }
 0x1e6   : > { %v2236_v7 = vadd.f32 %v2233_v3, %v2232_v1  ;;  %v2235_v8 = vmul.f32 %v2231_v2, %v2227_v5 }
 0x1e8   : > { %2237 = vadd.xlane.f32.xlu0 %v2236_v7  ;;  %v2239_v9 = vadd.f32 %v2235_v8, %v2234_v6 }
 0x1ec   : > { %2240 = vadd.xlane.f32.xlu0 %v2239_v9 }
 0x275   : > { %v2238_v10 = vpop.xlane.xlu0 %2237 }
 0x279   : > { %v2241_v11 = vpop.xlane.xlu0 %2240 }
 0x27a   : > { %v2242_v12 = vadd.f32 %v2241_v11, %v2238_v10 }
 0x27c   : > { %v2243_v13 = vrot.slane %v2242_v12, 4 }
 0x27e   : > { %v2244_v14 = vadd.f32 %v2243_v13, %v2242_v12 }
 0x280   : > { %v2245_v15 = vrot.slane %v2244_v14, 2 }
 0x282   : > { %v2246_v16 = vadd.f32 %v2245_v15, %v2244_v14 }
 0x284   : > { %v2247_v17 = vrot.slane %v2246_v16, 1 }
 0x286   : > { %v2248_v19 = vadd.f32 %v2247_v17, %v2246_v16 }
 0x288   : > { %v2250_v20 = vadd.f32 %v2249_v18, %v2248_v19 }
 0x28a   : > { %2252 = vst.msk [vmem:[%s227_s10] sm:$0x1] %vm2251_vm4, %v2250_v20 }
 0x28b PF: > { %s17_s20 = sadd.s32 1, %s3013_s20  }
 0x28c   : > { %p14_p5 = scmp.ge.s32.totalorder %s17_s20, 4  }
 0x28e   :  { %16 = sbr.rel (!%p14_p5) target bundleno = 3 (0x3), region = 70 }

</bundles_post_ra>
